<compile_context>
chip_gen: v7x
topology: tpu7x:2x2x1
jax: 0.10.0
libtpu: 0.0.40
codegen_flags: <defaults>
</compile_context>

<pallas_src>
import jax
import jax.numpy as jnp
from jax import lax
from jax.experimental import pallas as pl
from jax.experimental.pallas import tpu as pltpu

LEAKY_SLOPE = 0.01
BN_EPS = 1e-5
LANE = 128


def _round_up(x, m):
    return ((x + m - 1) // m) * m


def _leaky(x):
    return jnp.where(x > 0, x, LEAKY_SLOPE * x)


# --------------------------------------------------------------------------
# Kernel 1: fused DepthWiseConv2D stage
#   depthwise(kh x kw, dilation) + bias -> LeakyReLU -> inner BN affine ->
#   1x1 pointwise (bf16 MXU matmul, f32 acc) + bias -> LeakyReLU ->
#   outer BN affine (identity for the shortcut stage).
# --------------------------------------------------------------------------
def _make_stage_kernel(kh, kw, dil, H, W, Cin_p, Cout_p):
    HW = H * W

    def kernel(xp_ref, wd_ref, bd_ref, sin_ref, tin_ref,
               wp_ref, bp_ref, sout_ref, tout_ref, o_ref):
        # xp_ref : (Hp, Wp, Cin_p)  spatially padded input frame (1 batch item)
        # wd_ref : (kh, kw, Cin_p)  depthwise weights (per-channel)
        # bd_ref : (1, Cin_p)       depthwise bias
        # sin/tin: (1, Cin_p)       inner BN folded scale / shift
        # wp_ref : (Cin_p, Cout_p)  1x1 pointwise weight, bf16
        # bp_ref : (1, Cout_p)      pointwise bias
        # sout/tout: (1, Cout_p)    outer BN folded scale / shift (or identity)
        # o_ref  : (H, W, Cout_p)
        xp = xp_ref[...]
        wd = wd_ref[...]

        # ---- depthwise conv (VPU, unrolled taps) ----
        acc = None
        for a in range(kh):
            for b in range(kw):
                patch = lax.slice(xp, (a * dil, b * dil, 0),
                                  (a * dil + H, b * dil + W, Cin_p))
                term = patch * wd[a:a + 1, b:b + 1, :]
                acc = term if acc is None else acc + term

        # ---- bias + LeakyReLU + inner BN affine (broadcasts hoisted) ----
        bd = bd_ref[...].reshape(1, 1, Cin_p)
        s_in = sin_ref[...].reshape(1, 1, Cin_p)
        t_in = tin_ref[...].reshape(1, 1, Cin_p)
        t = acc + bd
        t = jnp.where(t > 0, t, LEAKY_SLOPE * t)
        t = t * s_in + t_in

        # ---- pointwise conv: one lane-dense bf16 MXU matmul, f32 acc ----
        y = jnp.dot(t.reshape(HW, Cin_p).astype(jnp.bfloat16), wp_ref[...],
                    preferred_element_type=jnp.float32)
        y = y + bp_ref[...]

        # ---- stage LeakyReLU + outer BN affine ----
        y = jnp.where(y > 0, y, LEAKY_SLOPE * y)
        y = y * sout_ref[...] + tout_ref[...]
        o_ref[...] = y.reshape(H, W, Cout_p)

    return kernel


def _dw_stage(xp, stage_params, *, kh, kw, dil, H, W):
    wd, bd, s_in, t_in, wp, bp, s_out, t_out = stage_params
    N, Hp, Wp, Cin_p = xp.shape
    Cout_p = wp.shape[-1]
    kernel = _make_stage_kernel(kh, kw, dil, H, W, Cin_p, Cout_p)
    flops = 2 * N * H * W * (kh * kw * Cin_p + Cin_p * Cout_p)
    bytes_accessed = (4 * N * (Hp * Wp * Cin_p + H * W * Cout_p)
                      + 2 * Cin_p * Cout_p + 4 * kh * kw * Cin_p)
    return pl.pallas_call(
        kernel,
        out_shape=jax.ShapeDtypeStruct((N, H, W, Cout_p), jnp.float32),
        grid_spec=pltpu.PrefetchScalarGridSpec(
            num_scalar_prefetch=0,
            grid=(N,),
            in_specs=[
                pl.BlockSpec((None, Hp, Wp, Cin_p), lambda n: (n, 0, 0, 0)),
                pl.BlockSpec((kh, kw, Cin_p), lambda n: (0, 0, 0)),
                pl.BlockSpec((1, Cin_p), lambda n: (0, 0)),
                pl.BlockSpec((1, Cin_p), lambda n: (0, 0)),
                pl.BlockSpec((1, Cin_p), lambda n: (0, 0)),
                pl.BlockSpec((Cin_p, Cout_p), lambda n: (0, 0)),
                pl.BlockSpec((1, Cout_p), lambda n: (0, 0)),
                pl.BlockSpec((1, Cout_p), lambda n: (0, 0)),
                pl.BlockSpec((1, Cout_p), lambda n: (0, 0)),
            ],
            out_specs=pl.BlockSpec((None, H, W, Cout_p), lambda n: (n, 0, 0, 0)),
        ),
        compiler_params=pltpu.CompilerParams(dimension_semantics=("parallel",)),
        cost_estimate=pl.CostEstimate(flops=flops, transcendentals=0,
                                      bytes_accessed=bytes_accessed),
    )(xp, wd, bd, s_in, t_in, wp, bp, s_out, t_out)


# --------------------------------------------------------------------------
# Kernel 2: conv5 on concat(resA1, resA2, resA3) + act5 + bn4 + shortcut add
#           + AvgPool2d(kernel=3, stride=2, padding=1) fused.
# --------------------------------------------------------------------------
def _make_final_kernel(H, W, C_p, Hp_out, Wp_out):
    HW = H * W

    def kernel(r1_ref, r2_ref, r3_ref, sc_ref,
               wd_ref, bd_ref, sin_ref, tin_ref,
               wp_ref, bp_ref, s4_ref, t4_ref,
               resA_ref, resB_ref):
        wd = wd_ref[...]          # (3, C_p) 1x1 depthwise weight per branch chunk
        bd = bd_ref[...]
        s_in = sin_ref[...]
        t_in = tin_ref[...]

        acc = None
        branches = (r1_ref, r2_ref, r3_ref)
        for k in range(3):
            rk = branches[k][...]                                   # (H, W, C_p)
            t = rk * wd[k:k + 1, :].reshape(1, 1, C_p) + bd[k:k + 1, :].reshape(1, 1, C_p)
            t = jnp.where(t > 0, t, LEAKY_SLOPE * t)
            t = t * s_in[k:k + 1, :].reshape(1, 1, C_p) + t_in[k:k + 1, :].reshape(1, 1, C_p)
            # concat-then-1x1-conv == sum of three row-block matmuls
            term = jnp.dot(t.reshape(HW, C_p).astype(jnp.bfloat16),
                           wp_ref[k], preferred_element_type=jnp.float32)
            acc = term if acc is None else acc + term

        y = acc + bp_ref[...]
        y = jnp.where(y > 0, y, LEAKY_SLOPE * y)                    # act5
        y = y * s4_ref[...] + t4_ref[...]                           # bn4
        resA = y.reshape(H, W, C_p) + sc_ref[...]                   # residual add
        resA_ref[...] = resA

        # ---- AvgPool2d(3, stride=2, pad=1, count_include_pad=True) ----
        # Dropout2d is eval-mode identity, so the pool input is resA.
        inv9 = 1.0 / 9.0
        for i in range(Hp_out):
            rows = [r for r in (2 * i - 1, 2 * i, 2 * i + 1) if 0 <= r < H]
            rsum = resA[rows[0]]
            for r in rows[1:]:
                rsum = rsum + resA[r]                               # (W, C_p)
            for j in range(Wp_out):
                cols = [c for c in (2 * j - 1, 2 * j, 2 * j + 1) if 0 <= c < W]
                v = rsum[cols[0]:cols[0] + 1, :]
                for c in cols[1:]:
                    v = v + rsum[c:c + 1, :]                        # (1, C_p)
                resB_ref[i, j:j + 1, :] = v * inv9

    return kernel


def _final_stage(resA1, resA2, resA3, shortcut, final_params, *, H, W):
    wd5, bd5, sin5, tin5, wp5, bp5, s4, t4 = final_params
    N, _, _, C_p = resA1.shape
    Hp_out = (H + 2 - 3) // 2 + 1
    Wp_out = (W + 2 - 3) // 2 + 1
    kernel = _make_final_kernel(H, W, C_p, Hp_out, Wp_out)
    flops = 2 * N * H * W * 3 * C_p * C_p
    bytes_accessed = 4 * N * H * W * C_p * 6 + 2 * 3 * C_p * C_p
    return pl.pallas_call(
        kernel,
        out_shape=(
            jax.ShapeDtypeStruct((N, H, W, C_p), jnp.float32),
            jax.ShapeDtypeStruct((N, Hp_out, Wp_out, C_p), jnp.float32),
        ),
        grid_spec=pltpu.PrefetchScalarGridSpec(
            num_scalar_prefetch=0,
            grid=(N,),
            in_specs=[
                pl.BlockSpec((None, H, W, C_p), lambda n: (n, 0, 0, 0)),
                pl.BlockSpec((None, H, W, C_p), lambda n: (n, 0, 0, 0)),
                pl.BlockSpec((None, H, W, C_p), lambda n: (n, 0, 0, 0)),
                pl.BlockSpec((None, H, W, C_p), lambda n: (n, 0, 0, 0)),
                pl.BlockSpec((3, C_p), lambda n: (0, 0)),
                pl.BlockSpec((3, C_p), lambda n: (0, 0)),
                pl.BlockSpec((3, C_p), lambda n: (0, 0)),
                pl.BlockSpec((3, C_p), lambda n: (0, 0)),
                pl.BlockSpec((3, C_p, C_p), lambda n: (0, 0, 0)),
                pl.BlockSpec((1, C_p), lambda n: (0, 0)),
                pl.BlockSpec((1, C_p), lambda n: (0, 0)),
                pl.BlockSpec((1, C_p), lambda n: (0, 0)),
            ],
            out_specs=[
                pl.BlockSpec((None, H, W, C_p), lambda n: (n, 0, 0, 0)),
                pl.BlockSpec((None, Hp_out, Wp_out, C_p), lambda n: (n, 0, 0, 0)),
            ],
        ),
        compiler_params=pltpu.CompilerParams(dimension_semantics=("parallel",)),
        cost_estimate=pl.CostEstimate(flops=flops, transcendentals=0,
                                      bytes_accessed=bytes_accessed),
    )(resA1, resA2, resA3, shortcut, wd5, bd5, sin5, tin5, wp5, bp5, s4, t4)


# --------------------------------------------------------------------------
# Parameter folding / channel padding (glue)
# --------------------------------------------------------------------------
def _fold_bn(gamma, beta, mean, var, eps=BN_EPS):
    scale = gamma / jnp.sqrt(var + eps)
    shift = beta - mean * scale
    return scale, shift


def _pad_last(a, target):
    return jnp.pad(a, [(0, 0)] * (a.ndim - 1) + [(0, target - a.shape[-1])])


def _prep_stage_params(dw, outer_bn, cin_p, cout_p):
    """Fold one DepthWiseConv2D (+ optional following BatchNorm) into padded,
    lane-dense kernel operands (padded lanes carry exact zeros)."""
    cin = dw["dw_w"].shape[0]
    cout = dw["pw_w"].shape[0]
    wd = _pad_last(jnp.transpose(dw["dw_w"][:, 0], (1, 2, 0)), cin_p)   # (kh,kw,cin_p)
    bd = _pad_last(dw["dw_b"], cin_p)[None, :]
    s_in, t_in = _fold_bn(dw["bn_g"], dw["bn_b"], dw["bn_m"], dw["bn_v"])
    s_in = _pad_last(s_in, cin_p)[None, :]
    t_in = _pad_last(t_in, cin_p)[None, :]
    wp = jnp.zeros((cin_p, cout_p), jnp.float32)
    wp = wp.at[:cin, :cout].set(dw["pw_w"][:, :, 0, 0].T).astype(jnp.bfloat16)
    bp = _pad_last(dw["pw_b"], cout_p)[None, :]
    if outer_bn is None:
        s_out = jnp.ones((1, cout_p), jnp.float32)
        t_out = jnp.zeros((1, cout_p), jnp.float32)
    else:
        s_o, t_o = _fold_bn(*outer_bn)
        s_out = _pad_last(s_o, cout_p)[None, :]
        t_out = _pad_last(t_o, cout_p)[None, :]
    return wd, bd, s_in, t_in, wp, bp, s_out, t_out


def _prep_final_params(dw5, bn4, cf, c_p):
    """conv5 operates on concat(resA1, resA2, resA3); split its per-channel
    params and pointwise weight rows into the three branch chunks so no
    concat is needed inside the kernel."""
    wd = _pad_last(dw5["dw_w"][:, 0, 0, 0].reshape(3, cf), c_p)          # (3, c_p)
    bd = _pad_last(dw5["dw_b"].reshape(3, cf), c_p)
    s_in, t_in = _fold_bn(dw5["bn_g"], dw5["bn_b"], dw5["bn_m"], dw5["bn_v"])
    s_in = _pad_last(s_in.reshape(3, cf), c_p)
    t_in = _pad_last(t_in.reshape(3, cf), c_p)
    wp = jnp.zeros((3, c_p, c_p), jnp.float32)
    wp = wp.at[:, :cf, :cf].set(dw5["pw_w"][:, :, 0, 0].T.reshape(3, cf, cf))
    wp = wp.astype(jnp.bfloat16)
    bp = _pad_last(dw5["pw_b"], c_p)[None, :]
    s4, t4 = _fold_bn(*bn4)
    s4 = _pad_last(s4, c_p)[None, :]
    t4 = _pad_last(t4, c_p)[None, :]
    return wd, bd, s_in, t_in, wp, bp, s4, t4


# --------------------------------------------------------------------------
# Full ResBlockDP forward (pooling=True, eval mode)
# --------------------------------------------------------------------------
def resblock_dp_forward(x, params):
    """x: (N, in_filters, H, W) NCHW.  Returns (resB, resA) in NCHW."""
    N, cin, H, W = x.shape
    cf = params["bn1"][0].shape[0]              # out_filters
    cin_p = _round_up(cin, LANE)
    cf_p = _round_up(cf, LANE)

    # NCHW -> NHWC, zero-pad channels to a lane-dense multiple of 128.
    xh = jnp.transpose(x, (0, 2, 3, 1))
    xh = jnp.pad(xh, ((0, 0), (0, 0), (0, 0), (0, cin_p - cin)))

    p1 = _prep_stage_params(params["conv1"], None, cin_p, cf_p)
    p2 = _prep_stage_params(params["conv2"], params["bn1"], cin_p, cf_p)
    p3 = _prep_stage_params(params["conv3"], params["bn2"], cf_p, cf_p)
    p4 = _prep_stage_params(params["conv4"], params["bn3"], cf_p, cf_p)
    p5 = _prep_final_params(params["conv5"], params["bn4"], cf, cf_p)

    # conv1 (1x1 DW) + act1 -> shortcut
    shortcut = _dw_stage(xh, p1, kh=1, kw=1, dil=1, H=H, W=W)
    # conv2 (3x3 DW, pad 1) + act2 + bn1 -> resA1
    resA1 = _dw_stage(jnp.pad(xh, ((0, 0), (1, 1), (1, 1), (0, 0))),
                      p2, kh=3, kw=3, dil=1, H=H, W=W)
    # conv3 (3x3 DW, dil 2, pad 2) + act3 + bn2 -> resA2
    resA2 = _dw_stage(jnp.pad(resA1, ((0, 0), (2, 2), (2, 2), (0, 0))),
                      p3, kh=3, kw=3, dil=2, H=H, W=W)
    # conv4 (2x2 DW, dil 2, pad 1) + act4 + bn3 -> resA3
    resA3 = _dw_stage(jnp.pad(resA2, ((0, 0), (1, 1), (1, 1), (0, 0))),
                      p4, kh=2, kw=2, dil=2, H=H, W=W)
    # conv5 + act5 + bn4 + shortcut add + avg-pool (fused)
    resA_p, resB_p = _final_stage(resA1, resA2, resA3, shortcut, p5, H=H, W=W)

    resA = jnp.transpose(resA_p[..., :cf], (0, 3, 1, 2))
    resB = jnp.transpose(resB_p[..., :cf], (0, 3, 1, 2))
    return resB, resA


# --------------------------------------------------------------------------
# Pure-JAX reference (eval-mode semantics) for verification
# --------------------------------------------------------------------------
def _bn_eval_nchw(x, g, b, m, v, eps=BN_EPS):
    s = g / jnp.sqrt(v + eps)
    return (x - m[None, :, None, None]) * s[None, :, None, None] + b[None, :, None, None]


def _dw_conv2d_ref(x, dw, *, dilation=1, padding=0):
    c = x.shape[1]
    y = lax.conv_general_dilated(
        x, dw["dw_w"], (1, 1), [(padding, padding), (padding, padding)],
        rhs_dilation=(dilation, dilation),
        dimension_numbers=("NCHW", "OIHW", "NCHW"),
        feature_group_count=c)
    y = y + dw["dw_b"][None, :, None, None]
    y = _bn_eval_nchw(_leaky(y), dw["bn_g"], dw["bn_b"], dw["bn_m"], dw["bn_v"])
    y = lax.conv_general_dilated(
        y, dw["pw_w"], (1, 1), [(0, 0), (0, 0)],
        dimension_numbers=("NCHW", "OIHW", "NCHW"))
    return y + dw["pw_b"][None, :, None, None]


def reference_forward(x, params):
    shortcut = _leaky(_dw_conv2d_ref(x, params["conv1"]))
    resA = _leaky(_dw_conv2d_ref(x, params["conv2"], padding=1))
    resA1 = _bn_eval_nchw(resA, *params["bn1"])
    resA = _leaky(_dw_conv2d_ref(resA1, params["conv3"], dilation=2, padding=2))
    resA2 = _bn_eval_nchw(resA, *params["bn2"])
    resA = _leaky(_dw_conv2d_ref(resA2, params["conv4"], dilation=2, padding=1))
    resA3 = _bn_eval_nchw(resA, *params["bn3"])
    concat = jnp.concatenate([resA1, resA2, resA3], axis=1)
    resA = _leaky(_dw_conv2d_ref(concat, params["conv5"]))
    resA = _bn_eval_nchw(resA, *params["bn4"])
    resA = shortcut + resA
    resB = lax.reduce_window(resA, 0.0, lax.add, (1, 1, 3, 3), (1, 1, 2, 2),
                             [(0, 0), (0, 0), (1, 1), (1, 1)]) / 9.0
    return resB, resA


# --------------------------------------------------------------------------
# Deterministic synthetic parameters + self-check
# --------------------------------------------------------------------------
def _make_dw_params(key, cin, cout, k):
    ks = jax.random.split(key, 8)
    return dict(
        dw_w=0.25 * jax.random.normal(ks[0], (cin, 1, k, k), jnp.float32),
        dw_b=0.1 * jax.random.normal(ks[1], (cin,), jnp.float32),
        bn_g=1.0 + 0.1 * jax.random.normal(ks[2], (cin,), jnp.float32),
        bn_b=0.1 * jax.random.normal(ks[3], (cin,), jnp.float32),
        bn_m=0.1 * jax.random.normal(ks[4], (cin,), jnp.float32),
        bn_v=jax.random.uniform(ks[5], (cin,), jnp.float32, 0.5, 1.5),
        pw_w=0.25 * jax.random.normal(ks[6], (cout, cin, 1, 1), jnp.float32),
        pw_b=0.1 * jax.random.normal(ks[7], (cout,), jnp.float32),
    )


def _make_bn_params(key, c):
    ks = jax.random.split(key, 4)
    return (1.0 + 0.1 * jax.random.normal(ks[0], (c,), jnp.float32),
            0.1 * jax.random.normal(ks[1], (c,), jnp.float32),
            0.1 * jax.random.normal(ks[2], (c,), jnp.float32),
            jax.random.uniform(ks[3], (c,), jnp.float32, 0.5, 1.5))


if __name__ == "__main__":
    N, in_filters, H, W = 2, 4, 16, 16
    out_filters = 8

    key = jax.random.PRNGKey(0)
    kx, k1, k2, k3, k4, k5, kb1, kb2, kb3, kb4 = jax.random.split(key, 10)
    x = jax.random.normal(kx, (N, in_filters, H, W), jnp.float32)

    params = dict(
        conv1=_make_dw_params(k1, in_filters, out_filters, 1),
        conv2=_make_dw_params(k2, in_filters, out_filters, 3),
        conv3=_make_dw_params(k3, out_filters, out_filters, 3),
        conv4=_make_dw_params(k4, out_filters, out_filters, 2),
        conv5=_make_dw_params(k5, 3 * out_filters, out_filters, 1),
        bn1=_make_bn_params(kb1, out_filters),
        bn2=_make_bn_params(kb2, out_filters),
        bn3=_make_bn_params(kb3, out_filters),
        bn4=_make_bn_params(kb4, out_filters),
    )

    resB, resA = resblock_dp_forward(x, params)
    resB = jax.block_until_ready(resB)
    resA = jax.block_until_ready(resA)

    refB, refA = reference_forward(x, params)

    assert resA.shape == refA.shape == (N, out_filters, H, W), (resA.shape, refA.shape)
    assert resB.shape == refB.shape == (N, out_filters, H // 2, W // 2), (resB.shape, refB.shape)
    assert bool(jnp.all(jnp.isfinite(resA))) and bool(jnp.all(jnp.isfinite(resB)))
    errA = float(jnp.max(jnp.abs(resA - refA)))
    errB = float(jnp.max(jnp.abs(resB - refB)))
    assert jnp.allclose(resA, refA, atol=5e-2, rtol=5e-2), errA
    assert jnp.allclose(resB, refB, atol=5e-2, rtol=5e-2), errB
    print("KERNEL_OK")
</pallas_src>

<mosaic_0001>
module attributes {stable_mosaic.version = 11 : i64} {
  func.func @kernel(%arg0: i32, %arg1: memref<1x16x16x128xf32, #tpu.memory_space<vmem>>, %arg2: memref<1x1x128xf32, #tpu.memory_space<vmem>>, %arg3: memref<1x128xf32, #tpu.memory_space<vmem>>, %arg4: memref<1x128xf32, #tpu.memory_space<vmem>>, %arg5: memref<1x128xf32, #tpu.memory_space<vmem>>, %arg6: memref<128x128xbf16, #tpu.memory_space<vmem>>, %arg7: memref<1x128xf32, #tpu.memory_space<vmem>>, %arg8: memref<1x128xf32, #tpu.memory_space<vmem>>, %arg9: memref<1x128xf32, #tpu.memory_space<vmem>>, %arg10: memref<1x16x16x128xf32, #tpu.memory_space<vmem>>) attributes {dimension_semantics = [#tpu.dimension_semantics<parallel>], iteration_bounds = array<i64: 2>, scalar_prefetch = 0 : i64, scratch_operands = 0 : i64, tpu.core_type = #tpu.core_type<tc>, window_params = [{transform_indices = @transform_0, window_bounds = array<i64: 1, 16, 16, 128>}, {pipeline_mode = #tpu.pipeline_mode<synchronous>, transform_indices = @transform_1, window_bounds = array<i64: 1, 1, 128>}, {pipeline_mode = #tpu.pipeline_mode<synchronous>, transform_indices = @transform_2, window_bounds = array<i64: 1, 128>}, {pipeline_mode = #tpu.pipeline_mode<synchronous>, transform_indices = @transform_3, window_bounds = array<i64: 1, 128>}, {pipeline_mode = #tpu.pipeline_mode<synchronous>, transform_indices = @transform_4, window_bounds = array<i64: 1, 128>}, {pipeline_mode = #tpu.pipeline_mode<synchronous>, transform_indices = @transform_5, window_bounds = array<i64: 128, 128>}, {pipeline_mode = #tpu.pipeline_mode<synchronous>, transform_indices = @transform_6, window_bounds = array<i64: 1, 128>}, {pipeline_mode = #tpu.pipeline_mode<synchronous>, transform_indices = @transform_7, window_bounds = array<i64: 1, 128>}, {pipeline_mode = #tpu.pipeline_mode<synchronous>, transform_indices = @transform_8, window_bounds = array<i64: 1, 128>}, {transform_indices = @transform_9, window_bounds = array<i64: 1, 16, 16, 128>}]} {
    %c0 = arith.constant 0 : index
    %c0_0 = arith.constant 0 : index
    %c0_1 = arith.constant 0 : index
    %c0_2 = arith.constant 0 : index
    %0 = vector.load %arg1[%c0, %c0_0, %c0_1, %c0_2] : memref<1x16x16x128xf32, #tpu.memory_space<vmem>>, vector<1x16x16x128xf32>
    %1 = vector.shape_cast %0 : vector<1x16x16x128xf32> to vector<16x16x128xf32>
    %c0_3 = arith.constant 0 : index
    %c0_4 = arith.constant 0 : index
    %c0_5 = arith.constant 0 : index
    %2 = vector.load %arg2[%c0_3, %c0_4, %c0_5] : memref<1x1x128xf32, #tpu.memory_space<vmem>>, vector<1x1x128xf32>
    %3 = vector.extract_strided_slice %1 {offsets = [0, 0, 0], sizes = [16, 16, 128], strides = [1, 1, 1]} : vector<16x16x128xf32> to vector<16x16x128xf32>
    %4 = vector.broadcast %2 : vector<1x1x128xf32> to vector<16x16x128xf32>
    %5 = arith.mulf %3, %4 : vector<16x16x128xf32>
    %c0_6 = arith.constant 0 : index
    %c0_7 = arith.constant 0 : index
    %6 = vector.load %arg3[%c0_6, %c0_7] : memref<1x128xf32, #tpu.memory_space<vmem>>, vector<1x128xf32>
    %7 = vector.shape_cast %6 : vector<1x128xf32> to vector<1x1x128xf32>
    %c0_8 = arith.constant 0 : index
    %c0_9 = arith.constant 0 : index
    %8 = vector.load %arg4[%c0_8, %c0_9] : memref<1x128xf32, #tpu.memory_space<vmem>>, vector<1x128xf32>
    %9 = vector.shape_cast %8 : vector<1x128xf32> to vector<1x1x128xf32>
    %c0_10 = arith.constant 0 : index
    %c0_11 = arith.constant 0 : index
    %10 = vector.load %arg5[%c0_10, %c0_11] : memref<1x128xf32, #tpu.memory_space<vmem>>, vector<1x128xf32>
    %11 = vector.shape_cast %10 : vector<1x128xf32> to vector<1x1x128xf32>
    %12 = vector.broadcast %7 : vector<1x1x128xf32> to vector<16x16x128xf32>
    %13 = arith.addf %5, %12 : vector<16x16x128xf32>
    %cst = arith.constant 0.000000e+00 : f32
    %14 = vector.broadcast %cst : f32 to vector<16x16x128xf32>
    %15 = arith.cmpf ogt, %13, %14 : vector<16x16x128xf32>
    %cst_12 = arith.constant 0.00999999977 : f32
    %16 = vector.broadcast %cst_12 : f32 to vector<16x16x128xf32>
    %17 = arith.mulf %16, %13 : vector<16x16x128xf32>
    %18 = arith.select %15, %13, %17 : vector<16x16x128xi1>, vector<16x16x128xf32>
    %19 = vector.broadcast %9 : vector<1x1x128xf32> to vector<16x16x128xf32>
    %20 = arith.mulf %18, %19 : vector<16x16x128xf32>
    %21 = vector.broadcast %11 : vector<1x1x128xf32> to vector<16x16x128xf32>
    %22 = arith.addf %20, %21 : vector<16x16x128xf32>
    %23 = vector.shape_cast %22 : vector<16x16x128xf32> to vector<256x128xf32>
    %24 = arith.truncf %23 : vector<256x128xf32> to vector<256x128xbf16>
    %c0_13 = arith.constant 0 : index
    %c0_14 = arith.constant 0 : index
    %25 = vector.load %arg6[%c0_13, %c0_14] : memref<128x128xbf16, #tpu.memory_space<vmem>>, vector<128x128xbf16>
    %cst_15 = arith.constant dense<0.000000e+00> : vector<256x128xf32>
    %26 = tpu.matmul %24, %25, %cst_15 {dimension_numbers = #tpu.dot_dimension_numbers<[1], [0], [0], [1], [0, 0, 1, 1], [], []>} : vector<256x128xbf16>, vector<128x128xbf16>, vector<256x128xf32> -> vector<256x128xf32>
    %c0_16 = arith.constant 0 : index
    %c0_17 = arith.constant 0 : index
    %27 = vector.load %arg7[%c0_16, %c0_17] : memref<1x128xf32, #tpu.memory_space<vmem>>, vector<1x128xf32>
    %28 = vector.broadcast %27 : vector<1x128xf32> to vector<256x128xf32>
    %29 = arith.addf %26, %28 : vector<256x128xf32>
    %cst_18 = arith.constant 0.000000e+00 : f32
    %30 = vector.broadcast %cst_18 : f32 to vector<256x128xf32>
    %31 = arith.cmpf ogt, %29, %30 : vector<256x128xf32>
    %cst_19 = arith.constant 0.00999999977 : f32
    %32 = vector.broadcast %cst_19 : f32 to vector<256x128xf32>
    %33 = arith.mulf %32, %29 : vector<256x128xf32>
    %34 = arith.select %31, %29, %33 : vector<256x128xi1>, vector<256x128xf32>
    %c0_20 = arith.constant 0 : index
    %c0_21 = arith.constant 0 : index
    %35 = vector.load %arg8[%c0_20, %c0_21] : memref<1x128xf32, #tpu.memory_space<vmem>>, vector<1x128xf32>
    %36 = vector.broadcast %35 : vector<1x128xf32> to vector<256x128xf32>
    %37 = arith.mulf %34, %36 : vector<256x128xf32>
    %c0_22 = arith.constant 0 : index
    %c0_23 = arith.constant 0 : index
    %38 = vector.load %arg9[%c0_22, %c0_23] : memref<1x128xf32, #tpu.memory_space<vmem>>, vector<1x128xf32>
    %39 = vector.broadcast %38 : vector<1x128xf32> to vector<256x128xf32>
    %40 = arith.addf %37, %39 : vector<256x128xf32>
    %41 = vector.shape_cast %40 : vector<256x128xf32> to vector<16x16x128xf32>
    %c0_24 = arith.constant 0 : index
    %c0_25 = arith.constant 0 : index
    %c0_26 = arith.constant 0 : index
    %c0_27 = arith.constant 0 : index
    %42 = vector.load %arg10[%c0_24, %c0_25, %c0_26, %c0_27] : memref<1x16x16x128xf32, #tpu.memory_space<vmem>>, vector<1x16x16x128xf32>
    %43 = vector.shape_cast %42 : vector<1x16x16x128xf32> to vector<16x16x128xf32>
    %44 = vector.shape_cast %41 : vector<16x16x128xf32> to vector<1x16x16x128xf32>
    tpu.vector_store %arg10[%c0_24, %c0_25, %c0_26, %c0_27], %44 {strides = array<i32>} : memref<1x16x16x128xf32, #tpu.memory_space<vmem>>, vector<1x16x16x128xf32>,
    return
  }
  func.func @transform_0(%arg0: i32) -> (i32, i32, i32, i32) {
    %c0_i32 = arith.constant 0 : i32
    %c0_i32_0 = arith.constant 0 : i32
    %c0_i32_1 = arith.constant 0 : i32
    %c0_i32_2 = arith.constant 0 : i32
    return %arg0, %c0_i32, %c0_i32_0, %c0_i32_1 : i32, i32, i32, i32
  }
  func.func @transform_1(%arg0: i32) -> (i32, i32, i32) {
    %c0_i32 = arith.constant 0 : i32
    %c0_i32_0 = arith.constant 0 : i32
    %c0_i32_1 = arith.constant 0 : i32
    %c0_i32_2 = arith.constant 0 : i32
    return %c0_i32, %c0_i32_0, %c0_i32_1 : i32, i32, i32
  }
  func.func @transform_2(%arg0: i32) -> (i32, i32) {
    %c0_i32 = arith.constant 0 : i32
    %c0_i32_0 = arith.constant 0 : i32
    %c0_i32_1 = arith.constant 0 : i32
    return %c0_i32, %c0_i32_0 : i32, i32
  }
  func.func @transform_3(%arg0: i32) -> (i32, i32) {
    %c0_i32 = arith.constant 0 : i32
    %c0_i32_0 = arith.constant 0 : i32
    %c0_i32_1 = arith.constant 0 : i32
    return %c0_i32, %c0_i32_0 : i32, i32
  }
  func.func @transform_4(%arg0: i32) -> (i32, i32) {
    %c0_i32 = arith.constant 0 : i32
    %c0_i32_0 = arith.constant 0 : i32
    %c0_i32_1 = arith.constant 0 : i32
    return %c0_i32, %c0_i32_0 : i32, i32
  }
  func.func @transform_5(%arg0: i32) -> (i32, i32) {
    %c0_i32 = arith.constant 0 : i32
    %c0_i32_0 = arith.constant 0 : i32
    %c0_i32_1 = arith.constant 0 : i32
    return %c0_i32, %c0_i32_0 : i32, i32
  }
  func.func @transform_6(%arg0: i32) -> (i32, i32) {
    %c0_i32 = arith.constant 0 : i32
    %c0_i32_0 = arith.constant 0 : i32
    %c0_i32_1 = arith.constant 0 : i32
    return %c0_i32, %c0_i32_0 : i32, i32
  }
  func.func @transform_7(%arg0: i32) -> (i32, i32) {
    %c0_i32 = arith.constant 0 : i32
    %c0_i32_0 = arith.constant 0 : i32
    %c0_i32_1 = arith.constant 0 : i32
    return %c0_i32, %c0_i32_0 : i32, i32
  }
  func.func @transform_8(%arg0: i32) -> (i32, i32) {
    %c0_i32 = arith.constant 0 : i32
    %c0_i32_0 = arith.constant 0 : i32
    %c0_i32_1 = arith.constant 0 : i32
    return %c0_i32, %c0_i32_0 : i32, i32
  }
  func.func @transform_9(%arg0: i32) -> (i32, i32, i32, i32) {
    %c0_i32 = arith.constant 0 : i32
    %c0_i32_0 = arith.constant 0 : i32
    %c0_i32_1 = arith.constant 0 : i32
    %c0_i32_2 = arith.constant 0 : i32
    return %arg0, %c0_i32, %c0_i32_0, %c0_i32_1 : i32, i32, i32, i32
  }
}

</mosaic_0001>

<bundles_post_ra>
// kernel: tpu_custom_call.1
= control target key start
LH: loop header
LB: loop body
LE: loop exit
PB: predicated region body
PF: predicated region fallthrough
CT: control target
= control target key end

     0   :  { %14 = vsyncpa [#allocation3], 0  ;;  %s2119_s0 = inlined_call_operand.hbm [shape: f32[2,16,16,128], index: 0, kind: input, shape index: {}]   ;;  %s2120_s1 = inlined_call_operand.vmem [shape: f32[1,1,128], index: 1, kind: input, shape index: {}]   ;;  %s2121_s2 = inlined_call_operand.vmem [shape: f32[1,128], index: 2, kind: input, shape index: {}]   ;;  %s2122_s3 = inlined_call_operand.vmem [shape: f32[1,128], index: 3, kind: input, shape index: {}]   ;;  %s2123_s4 = inlined_call_operand.vmem [shape: f32[1,128], index: 4, kind: input, shape index: {}]   ;;  %s2124_s5 = inlined_call_operand.hbm [shape: bf16[128,128], index: 5, kind: input, shape index: {}]   ;;  %s2125_s6 = inlined_call_operand.vmem [shape: f32[1,128], index: 6, kind: input, shape index: {}]   ;;  %s2126_s7 = inlined_call_operand.vmem [shape: f32[1,128], index: 7, kind: input, shape index: {}]   ;;  %s2127_s8 = inlined_call_operand.vmem [shape: f32[1,128], index: 8, kind: input, shape index: {}]   ;;  %s2128_s9 = inlined_call_operand.hbm [shape: f32[2,16,16,128], index: 9, kind: output, shape index: {}]  }
   0x1   :  { %16 = vsyncpa [#allocation3 + $0x1], 0 }
   0x2   :  { %17 = vsyncpa [#allocation6], 0 }
   0x3   :  { %18 = vsyncpa [#allocation4], 0 }
   0x4   :  { %20 = vsyncpa [#allocation4 + $0x1], 0  ;;  %s1583_s30 = smov 0   ;;  %s1585_s10 = smov 0  }
   0x5   :  { %s1587_s11 = smov 0   ;;  %s1589_s12 = smov 0  }
   0x6 LB: > { %s1604_s13 = sadd.s32 4294967295, %s1522_s12   ;;  %s1202_s14 = sadd.s32 4294967294, %s1522_s12   ;;  %s1522_s12 = sphi %s1589_s12, %s2151_s12   ;;  %s1518_s11 = sphi %s1587_s11, %s2154_s11   ;;  %s1514_s10 = sphi %s1585_s10, %s2153_s10   ;;  %s1510_s30 = sphi %s1583_s30, %s2152_s30  }
   0x7   : > { %p46_p0 = scmp.ne.s32.totalorder %s1514_s10, %s1510_s30  ;;  %p2129_p1 = scmp.eq.s32.totalorder %s1604_s13, 0 }
   0x8   : > { %p244_p3 = scmp.eq.s32.totalorder %s1202_s14, 1  ;;  %p1203_p5 = scmp.ge.s32.totalorder %s1522_s12, 1 }
   0x9   : > { %p1613_p4 = por %p2129_p1, %p46_p0  ;;  %p251_p7 = scmp.lt.s32.totalorder %s1522_s12, 3 }
   0xa   : > { %p1618_p6 = por %p244_p3, %p46_p0  ;;  %s1524_s18 = smov [#allocation5]  }
   0xb   : > { %s2135_s15 = scalar_select %p1613_p4, 1, 0 }
   0xc   : > { %s2136_s16 = scalar_select %p1618_p6, 1, 0 }
   0xd   : > { %p1623_p8 = pnand %p1203_p5, %p251_p7  ;;  %s275_s19 = sshll.u32 %s1524_s18, 4  ;;  %s1627_s19 = int_to_ptr.vmem [resolvable:$true] %s275_s19 }
   0xe   : > { %2137 = sst [smem:[#allocation11_spill]] %s2136_s16  ;;  %s1639_s21 = sadd.s32 1, %s1522_s12  }
   0xf   : > { %s2138_s17 = scalar_select %p1623_p8, 1, 0 }
  0x10   : > { %p1331_p9 = pneg %p1623_p8  ;;  %2140 = sst [smem:[#allocation12_spill]] %s1639_s21 }
  0x11   : > { %s33_s22 = sadd.s32 1, %s1518_s11  ;;  %s30_s23 = ssub.s32 %s1522_s12, %s1639_s21 }
  0x12   : > { %p1634_p11 = pnand %p1331_p9, %p2129_p1  ;;  %s1394_s26 = scalar_lea.hbm %s2124_s5, 1024 }
  0x13   : > { %p1395_p12 = scmp.ne.s32.totalorder %s2124_s5, %s1394_s26  ;;  %p1401_p5 = scmp.lt.u32.totalorder %s1394_s26, %s2124_s5 }
  0x14   : > { %p1396_p13 = pneg %p1634_p11 }
  0x16   : > { %p1397_p0 = pnand %p1396_p13, %p1395_p12 }
  0x18   : > { %p1398_p3 = pneg %p1397_p0 }
  0x1a   : > { %p1403_p7 = pnand %p1401_p5, %p1398_p3 }
  0x1c   : > { %1406 = shalt.err (!%p1403_p7)
}
  0x1d   : > { %s1407_s18 = scalar_lea.vmem %s1627_s19, 1024  ;;  %p1415_p2 = scmp.lt.s32.totalorder %s1627_s19, %s1627_s19 }
  0x1e   : > { %p1408_p9 = scmp.ne.s32.totalorder %s1627_s19, %s1407_s18  ;;  %p1416_p6 = scmp.lt.s32.totalorder %s1407_s18, %s1407_s18 }
  0x20   : > { %p1410_p10 = pnand %p1408_p9, %p1396_p13  ;;  %p1417_p4 = por %p1416_p6, %p1415_p2 }
  0x22   : > { %p1411_p1 = pneg %p1410_p10 }
  0x24   : > { %p1418_p8 = pnand %p1417_p4, %p1411_p1 }
  0x26   : > { %1421 = shalt.err (!%p1418_p8)
}
  0x27   : > { %s1525_s24 = smov 64   ;;  %s1526_s25 = smov 4  }
  0x28   : > { %1334 = dma.hbm_to_vmem [thread:$0]  (!%p1634_p11), %s2124_s5, 1024, %s1627_s19, [#allocation6], %s1525_s24, %s1525_s24, %s1526_s25  }
  0x29   : > { %p31_p2 = scmp.eq.s32.totalorder %s30_s23, 0  ;;  %p40_p1 = scmp.ne.s32.totalorder %s1518_s11, %s1514_s10 }
  0x2a   : > { %p41_p4 = scmp.eq.s32.totalorder %s1522_s12, 0  ;;  %p1344_p6 = scmp.lt.s32.totalorder %s1522_s12, 2 }
  0x2b   : > { %s1670_s28 = scalar_select %p31_p2, %s1518_s11, %s33_s22  }
  0x2c   : > { %p42_p8 = por %p41_p4, %p40_p1  ;;  %p2141_p10 = scmp.eq.s32.totalorder %s1604_s13, 1 }
  0x2d   : > { %s298_s14 = sand.u32 1, %s1518_s11   ;;  %s1233_s18 = sshll.u32 %s1522_s12, 12 }
  0x2e   : > { %p1674_p12 = por %p2141_p10, %p40_p1  ;;  %s1206_s21 = sshll.u32 %s298_s14, 8 }
  0x2f   : > { %s1683_s26 = scalar_lea.hbm %s2119_s0, %s1233_s18  ;;  %s302_s19 = scalar_lea.vmem [#allocation2], %s1206_s21 }
  0x30   : > { %s309_s22 = sshll.u32 %s302_s19, 4  ;;  %p1685_p11 = pnand %p1344_p6, %p42_p8  ;;  %s1689_s22 = int_to_ptr.vmem [resolvable:$true] %s309_s22 }
  0x31   : > { %s1691_s24 = scalar_lea.sflag [#allocation3], %s298_s14  ;;  %s1422_s25 = scalar_lea.hbm %s1683_s26, 4096 }
  0x32   : > { %p1423_p13 = scmp.ne.s32.totalorder %s1683_s26, %s1422_s25  ;;  %p1424_p0 = pneg %p1685_p11 }
  0x33   : > { %s1427_s27 = scalar_lea.hbm %s2119_s0, 8192  ;;  %p1428_p7 = scmp.lt.u32.totalorder %s1683_s26, %s2119_s0 }
  0x34   : > { %p1425_p3 = pnand %p1424_p0, %p1423_p13  ;;  %p1429_p9 = scmp.lt.u32.totalorder %s1427_s27, %s1422_s25 }
  0x35   : > { %p1431_p1 = scmp.lt.u32.totalorder %s1422_s25, %s1683_s26 }
  0x36   : > { %p1426_p5 = pneg %p1425_p3  ;;  %p1430_p2 = por %p1429_p9, %p1428_p7 }
  0x38   : > { %p1432_p4 = por %p1431_p1, %p1430_p2 }
  0x3a   : > { %p1433_p6 = pnand %p1432_p4, %p1426_p5 }
  0x3c   : > { %1436 = shalt.err (!%p1433_p6)
}
  0x3d   : > { %s1437_s14 = scalar_lea.vmem %s1689_s22, 4096  ;;  %s1527_s19 = smov [#allocation2]  }
  0x3e   : > { %p1438_p8 = scmp.ne.s32.totalorder %s1689_s22, %s1437_s14  ;;  %s1442_s16 = sshll.u32 %s1527_s19, 4  ;;  %s1443_s16 = int_to_ptr.vmem [resolvable:$false] %s1442_s16 }
  0x3f   : > { %s1444_s21 = scalar_lea.vmem %s1443_s16, 8192  ;;  %p1445_p3 = scmp.lt.s32.totalorder %s1689_s22, %s1443_s16 }
  0x40   : > { %p1440_p10 = pnand %p1438_p8, %p1424_p0  ;;  %p1446_p7 = scmp.lt.s32.totalorder %s1444_s21, %s1437_s14 }
  0x42   : > { %p1441_p13 = pneg %p1440_p10  ;;  %p1447_p9 = por %p1446_p7, %p1445_p3 }
  0x44   : > { %p1448_p2 = pnand %p1447_p9, %p1441_p13 }
  0x46   : > { %1451 = shalt.err (!%p1448_p2)
}
  0x47   : > { %s1528_s25 = smov 128   ;;  %s1529_s27 = smov 8  }
  0x48   : > { %1338 = dma.hbm_to_vmem [thread:$0]  (!%p1685_p11), %s1683_s26, 4096, %s1689_s22, %s1691_s24, %s1528_s25, %s1528_s25, %s1529_s27  }
  0x49   : > { %p2144_p0 = scmp.ne.s32.totalorder %s2138_s17, 0 }
  0x4a   : > { %s1722_s18 = sand.u32 (!%p2144_p0), 1, %s1514_s10   ;;  %p2145_p5 = scmp.ne.s32.totalorder (!%p2144_p0), %s2135_s15, 0 }
  0x4b   : > { %321 = sbr.rel (%p2144_p0) target bundleno = 402 (0x192), region = 56  ;;  %s1210_s20 = sshll.u32 (!%p2144_p0), %s1722_s18, 8 }
  0x4c   : > { %s324_s14 = scalar_lea.sflag (!%p2144_p0), [#allocation3], %s1722_s18  ;;  %s1728_s19 = scalar_lea.vmem (!%p2144_p0), [#allocation2], %s1210_s20 }
  0x52   : > { %1497 = dma.done.wait (%p2145_p5), %s324_s14, 4096  }
  0x53   : > { %1499 = vsyncadd (%p2145_p5), %s324_s14, 4294963200  ;;  %p2146_p11 = scmp.eq.s32.totalorder %s1604_s13, 0 }
  0x55   : > { %1501 = dma.done.wait (%p2146_p11), [#allocation6], 1024   ;;  %p2147_p1 = pmov %p2146_p11 }
  0x56   : > { %v1386_v0 = vld [vmem:[#allocation5] sm:$0xff]   ;;  %v1387_v1 = vld [vmem:[#allocation5 + $0x8] sm:$0xff]   ;;  %v1388_v2 = vld [vmem:[#allocation5 + $0x10] sm:$0xff]   ;;  %s1952_s26 = scalar_lea.vmem [#allocation7], %s1210_s20  ;;  %s1234_s20 = sshll.u32 %s1604_s13, 12 }
  0x57   : > { %1503 = vsyncadd (%p2147_p1), [#allocation6], 4294966272  ;;  %1259 = vmatprep.subr.bf16.mxu0 %v1386_v0  ;;  %1307 = vmatprep.subr.bf16.mxu1 %v1386_v0  ;;  %v1389_v3 = vld [vmem:[#allocation5 + $0x18] sm:$0xff]   ;;  %v367_v4 = vld [vmem:[%s1728_s19] sm:$0xff]  ;;  %s1119_s22 = sshll.u32 %s1952_s26, 4  ;;  %s2070_s16 = scalar_lea.hbm %s2128_s9, %s1234_s20  ;;  %s2072_s22 = int_to_ptr.vmem [resolvable:$true] %s1119_s22 }
  0x58   : > { %1260 = vmatpush3.bf16.msra.mxu0 %v1386_v0  ;;  %1315 = vmatpush3.bf16.msra.mxu1 %v1386_v0  ;;  %v368_v5 = vld [vmem:[%s1728_s19 + $0x8] sm:$0xff]  ;;  %v1743_v6 = vld [vmem:[%s2120_s1] ss:$0 sm:$0xff]  ;;  %v369_v12 = vld [vmem:[%s1728_s19 + $0x10] sm:$0xff]  ;;  %s1106_s13 = scalar_lea.sflag [#allocation4], %s1722_s18  ;;  %s1452_s21 = scalar_lea.vmem %s2072_s22, 4096 }
  0x59   : > { %1261 = vmatprep.subr.bf16.mxu0 %v1387_v1  ;;  %1308 = vmatprep.subr.bf16.mxu1 %v1387_v1  ;;  %v406_v7 = vmul.f32 %v1743_v6, %v367_v4  ;;  %v407_v8 = vmul.f32 %v1743_v6, %v368_v5  ;;  %v1750_v9 = vld [vmem:[%s2121_s2] ss:$0 sm:$0xff]  ;;  %v384_v11 = vld [vmem:[%s1728_s19 + $0x88] sm:$0xff]  ;;  %v370_v16 = vld [vmem:[%s1728_s19 + $0x18] sm:$0xff]  ;;  %v408_v20 = vmul.f32 %v1743_v6, %v369_v12  ;;  %p1453_p4 = scmp.ne.s32.totalorder %s2072_s22, %s1452_s21  ;;  %s1530_s25 = smov [#allocation7]  }
  0x5a   : > { %v383_v10 = vld [vmem:[%s1728_s19 + $0x80] sm:$0xff]  ;;  %v423_v19 = vmul.f32 %v1743_v6, %v384_v11  ;;  %v409_v21 = vmul.f32 %v1743_v6, %v370_v16  ;;  %v385_v22 = vld [vmem:[%s1728_s19 + $0x90] sm:$0xff]  ;;  %v1391_v33 = vld [vmem:[#allocation5 + $0x28] sm:$0xff]   ;;  %s1456_s27 = sshll.u32 %s1530_s25, 4  ;;  %s1457_s27 = int_to_ptr.vmem [resolvable:$false] %s1456_s27 }
  0x5b   : > { %v447_v13 = vadd.f32 %v1750_v9, %v406_v7  ;;  %v448_v14 = vadd.f32 %v1750_v9, %v407_v8  ;;  %v422_v15 = vmul.f32 %v1743_v6, %v383_v10  ;;  %v1390_v17 = vld [vmem:[#allocation5 + $0x20] sm:$0xff]   ;;  %v449_v27 = vadd.f32 %v1750_v9, %v408_v20  ;;  %v386_v36 = vld [vmem:[%s1728_s19 + $0x98] sm:$0xff]  ;;  %v1392_v46 = vld [vmem:[#allocation5 + $0x30] sm:$0xff]   ;;  %p1454_p6 = pnand %p1453_p4, %p1674_p12  ;;  %s1458_s14 = scalar_lea.vmem %s1457_s27, 8192 }
  0x5c   : > { %1262 = vmatpush3.bf16.msra.mxu0 %v1387_v1  ;;  %1316 = vmatpush3.bf16.msra.mxu1 %v1387_v1  ;;  %v1762_v18 = vld [vmem:[%s2122_s3] ss:$0 sm:$0xff]  ;;  %v464_v26 = vadd.f32 %v1750_v9, %v423_v19  ;;  %v450_v28 = vadd.f32 %v1750_v9, %v409_v21  ;;  %v424_v32 = vmul.f32 %v1743_v6, %v385_v22  ;;  %v372_v59 = vld [vmem:[%s1728_s19 + $0x28] sm:$0xff]  ;;  %v1393_v63 = vld [vmem:[#allocation5 + $0x38] sm:$0xff]   ;;  %p1459_p10 = scmp.lt.s32.totalorder %s2072_s22, %s1457_s27  ;;  %p1460_p13 = scmp.lt.s32.totalorder %s1458_s14, %s1452_s21 }
  0x5d   : > { %1263 = vmatprep.subr.bf16.mxu0 %v1388_v2  ;;  %1309 = vmatprep.subr.bf16.mxu1 %v1388_v2  ;;  %vm479_vm0 = vcmp.gt.f32.partialorder %v447_v13, 0.0  ;;  %vm480_vm1 = vcmp.gt.f32.partialorder %v448_v14, 0.0  ;;  %v511_v23 = vmul.f32 0.01, %v447_v13  ;;  %v512_v24 = vmul.f32 0.01, %v448_v14  ;;  %p1455_p8 = pneg %p1454_p6 }
  0x5e   : > { %v463_v25 = vadd.f32 %v1750_v9, %v422_v15  ;;  %v1775_v29 = vld [vmem:[%s2123_s4] ss:$0 sm:$0xff]  ;;  %vm496_vm3 = vcmp.gt.f32.partialorder %v464_v26, 0.0  ;;  %v528_v38 = vmul.f32 0.01, %v464_v26  ;;  %vm481_vm4 = vcmp.gt.f32.partialorder %v449_v27, 0.0  ;;  %p1461_p3 = por %p1460_p13, %p1459_p10 }
  0x5f   : > { %v543_v30 = vsel %vm479_vm0, %v447_v13, %v511_v23  ;;  %v544_v31 = vsel %vm480_vm1, %v448_v14, %v512_v24  ;;  %vm482_vm5 = vcmp.gt.f32.partialorder %v450_v28, 0.0  ;;  %v513_v41 = vmul.f32 0.01, %v449_v27  ;;  %v371_v58 = vld [vmem:[%s1728_s19 + $0x20] sm:$0xff]  ;;  %v373_v21 = vld [vmem:[%s1728_s19 + $0x30] sm:$0xff] }
  0x60   : > { %1264 = vmatpush3.bf16.msra.mxu0 %v1388_v2  ;;  %1317 = vmatpush3.bf16.msra.mxu1 %v1388_v2  ;;  %v581_v34 = vmul.f32 %v1762_v18, %v543_v30  ;;  %v582_v35 = vmul.f32 %v1762_v18, %v544_v31  ;;  %vm495_vm2 = vcmp.gt.f32.partialorder %v463_v25, 0.0  ;;  %v527_v37 = vmul.f32 0.01, %v463_v25  ;;  %v387_v60 = vld [vmem:[%s1728_s19 + $0xa0] sm:$0xff]  ;;  %p1462_p7 = pnand %p1461_p3, %p1455_p8 }
  0x61   : > { %1265 = vmatprep.subr.bf16.mxu0 %v1389_v3  ;;  %1310 = vmatprep.subr.bf16.mxu1 %v1389_v3  ;;  %v514_v42 = vmul.f32 0.01, %v450_v28  ;;  %v560_v44 = vsel %vm496_vm3, %v464_v26, %v528_v38  ;;  %v425_v45 = vmul.f32 %v1743_v6, %v386_v36  ;;  %v545_v50 = vsel %vm481_vm4, %v449_v27, %v513_v41  ;;  %v374_v27 = vld [vmem:[%s1728_s19 + $0x38] sm:$0xff] }
  0x62   : > { %v619_v39 = vadd.f32 %v1775_v29, %v581_v34  ;;  %v620_v40 = vadd.f32 %v1775_v29, %v582_v35  ;;  %v559_v43 = vsel %vm495_vm2, %v463_v25, %v527_v37  ;;  %v598_v49 = vmul.f32 %v1762_v18, %v560_v44 }
  0x63   : > { %v597_v48 = vmul.f32 %v1762_v18, %v559_v43  ;;  %v546_v51 = vsel %vm482_vm5, %v450_v28, %v514_v42  ;;  %v465_v52 = vadd.f32 %v1750_v9, %v424_v32  ;;  %v466_v53 = vadd.f32 %v1750_v9, %v425_v45  ;;  %v389_v28 = vld [vmem:[%s1728_s19 + $0xb0] sm:$0xff] }
  0x64   : > { %1266 = vmatpush3.bf16.msra.mxu0 %v1389_v3  ;;  %1318 = vmatpush3.bf16.msra.mxu1 %v1389_v3  ;;  %v651_v47 = vpack.c.bf16 %v620_v40, %v619_v39  ;;  %v636_v55 = vadd.f32 %v1775_v29, %v598_v49  ;;  %v583_v56 = vmul.f32 %v1762_v18, %v545_v50  ;;  %v388_v3 = vld [vmem:[%s1728_s19 + $0xa8] sm:$0xff]  ;;  %v390_v39 = vld [vmem:[%s1728_s19 + $0xb8] sm:$0xff] }
  0x65   : > { %1267 = vmatprep.subr.bf16.mxu0 %v1390_v17  ;;  %1311 = vmatprep.subr.bf16.mxu1 %v1390_v17  ;;  %v635_v54 = vadd.f32 %v1775_v29, %v597_v48  ;;  %v584_v57 = vmul.f32 %v1762_v18, %v546_v51  ;;  %vm497_vm6 = vcmp.gt.f32.partialorder %v465_v52, 0.0  ;;  %vm498_vm7 = vcmp.gt.f32.partialorder %v466_v53, 0.0  ;;  %v375_v51 = vld [vmem:[%s1728_s19 + $0x40] sm:$0xff] }
  0x66   : > { %1275 = vmatprep.mubr.bf16.mxu0 %v651_v47  ;;  %v529_v61 = vmul.f32 0.01, %v465_v52  ;;  %v530_v62 = vmul.f32 0.01, %v466_v53  ;;  %v621_v1 = vadd.f32 %v1775_v29, %v583_v56  ;;  %v410_v7 = vmul.f32 %v1743_v6, %v371_v58  ;;  %v376_v58 = vld [vmem:[%s1728_s19 + $0x48] sm:$0xff] }
  0x67   : > { %v659_v0 = vpack.c.bf16 %v636_v55, %v635_v54  ;;  %v622_v2 = vadd.f32 %v1775_v29, %v584_v57  ;;  %v411_v8 = vmul.f32 %v1743_v6, %v372_v59  ;;  %v426_v13 = vmul.f32 %v1743_v6, %v387_v60 }
  0x68   : > { %1268 = vmatpush3.bf16.msra.mxu0 %v1390_v17  ;;  %1319 = vmatpush3.bf16.msra.mxu1 %v1390_v17  ;;  %v561_v4 = vsel %vm497_vm6, %v465_v52, %v529_v61  ;;  %v562_v5 = vsel %vm498_vm7, %v466_v53, %v530_v62  ;;  %v451_v14 = vadd.f32 %v1750_v9, %v410_v7 }
  0x69   : > { %1269 = vmatprep.subr.bf16.mxu0 %v1391_v33  ;;  %1312 = vmatprep.subr.bf16.mxu1 %v1391_v33  ;;  %v652_v10 = vpack.c.bf16 %v622_v2, %v621_v1  ;;  %v599_v11 = vmul.f32 %v1762_v18, %v561_v4  ;;  %v600_v12 = vmul.f32 %v1762_v18, %v562_v5 }
  0x6a   : > { %1291 = vmatprep.mubr.bf16.mxu1 %v659_v0  ;;  %v452_v15 = vadd.f32 %v1750_v9, %v411_v8  ;;  %v427_v16 = vmul.f32 %v1743_v6, %v388_v3  ;;  %v467_v20 = vadd.f32 %v1750_v9, %v426_v13  ;;  %vm483_vm8 = vcmp.gt.f32.partialorder %v451_v14, 0.0  ;;  %v392_v0 = vld [vmem:[%s1728_s19 + $0xc8] sm:$0xff] }
  0x6b   : > { %v637_v17 = vadd.f32 %v1775_v29, %v599_v11  ;;  %v638_v19 = vadd.f32 %v1775_v29, %v600_v12  ;;  %v515_v22 = vmul.f32 0.01, %v451_v14  ;;  %v412_v32 = vmul.f32 %v1743_v6, %v373_v21 }
  0x6c   : > { %1270 = vmatpush3.bf16.msra.mxu0 %v1391_v33  ;;  %1320 = vmatpush3.bf16.msra.mxu1 %v1391_v33  ;;  %vm484_vm9 = vcmp.gt.f32.partialorder %v452_v15, 0.0  ;;  %v516_v23 = vmul.f32 0.01, %v452_v15  ;;  %v468_v25 = vadd.f32 %v1750_v9, %v427_v16  ;;  %vm499_vm10 = vcmp.gt.f32.partialorder %v467_v20, 0.0 }
  0x6d   : > { %1271 = vmatprep.subr.bf16.mxu0 %v1392_v46  ;;  %1313 = vmatprep.subr.bf16.mxu1 %v1392_v46  ;;  %v660_v24 = vpack.c.bf16 %v638_v19, %v637_v17  ;;  %v531_v26 = vmul.f32 0.01, %v467_v20  ;;  %v547_v30 = vsel %vm483_vm8, %v451_v14, %v515_v22  ;;  %v413_v37 = vmul.f32 %v1743_v6, %v374_v27  ;;  %v377_v14 = vld [vmem:[%s1728_s19 + $0x50] sm:$0xff] }
  0x6e   : > { %v548_v31 = vsel %vm484_vm9, %v452_v15, %v516_v23  ;;  %v585_v33 = vmul.f32 %v1762_v18, %v547_v30  ;;  %vm500_vm11 = vcmp.gt.f32.partialorder %v468_v25, 0.0  ;;  %v532_v35 = vmul.f32 0.01, %v468_v25  ;;  %v393_v30 = vld [vmem:[%s1728_s19 + $0xd0] sm:$0xff] }
  0x6f   : > { %v586_v34 = vmul.f32 %v1762_v18, %v548_v31  ;;  %v563_v36 = vsel %vm499_vm10, %v467_v20, %v531_v26  ;;  %v453_v38 = vadd.f32 %v1750_v9, %v412_v32  ;;  %v428_v40 = vmul.f32 %v1743_v6, %v389_v28 }
  0x70   : > { %1272 = vmatpush3.bf16.msra.mxu0 %v1392_v46  ;;  %1321 = vmatpush3.bf16.msra.mxu1 %v1392_v46  ;;  %v623_v41 = vadd.f32 %v1775_v29, %v585_v33  ;;  %v564_v43 = vsel %vm500_vm11, %v468_v25, %v532_v35  ;;  %v601_v44 = vmul.f32 %v1762_v18, %v563_v36  ;;  %v378_v25 = vld [vmem:[%s1728_s19 + $0x58] sm:$0xff] }
  0x71   : > { %1273 = vmatprep.subr.bf16.mxu0 %v1393_v63  ;;  %1314 = vmatprep.subr.bf16.mxu1 %v1393_v63  ;;  %v624_v42 = vadd.f32 %v1775_v29, %v586_v34  ;;  %v602_v45 = vmul.f32 %v1762_v18, %v564_v43  ;;  %v454_v46 = vadd.f32 %v1750_v9, %v413_v37  ;;  %vm485_vm12 = vcmp.gt.f32.partialorder %v453_v38, 0.0 }
  0x72   : > { %v517_v48 = vmul.f32 0.01, %v453_v38  ;;  %v429_v49 = vmul.f32 %v1743_v6, %v390_v39  ;;  %v469_v50 = vadd.f32 %v1750_v9, %v428_v40  ;;  %v639_v52 = vadd.f32 %v1775_v29, %v601_v44  ;;  %v394_v39 = vld [vmem:[%s1728_s19 + $0xd8] sm:$0xff] }
  0x73   : > { %v653_v47 = vpack.c.bf16 %v624_v42, %v623_v41  ;;  %v640_v53 = vadd.f32 %v1775_v29, %v602_v45  ;;  %vm486_vm13 = vcmp.gt.f32.partialorder %v454_v46, 0.0  ;;  %v518_v54 = vmul.f32 0.01, %v454_v46 }
  0x74   : > { %1274 = vmatpush3.bf16.msra.mxu0 %v1393_v63  ;;  %1322 = vmatpush3.bf16.msra.mxu1 %v1393_v63  ;;  %v549_v55 = vsel %vm485_vm12, %v453_v38, %v517_v48  ;;  %v470_v56 = vadd.f32 %v1750_v9, %v429_v49  ;;  %vm501_vm14 = vcmp.gt.f32.partialorder %v469_v50, 0.0  ;;  %v533_v57 = vmul.f32 0.01, %v469_v50  ;;  %v391_v63 = vld [vmem:[%s1728_s19 + $0xc0] sm:$0xff] }
  0x75   : > { %v661_v59 = vpack.c.bf16 %v640_v53, %v639_v52  ;;  %v550_v60 = vsel %vm486_vm13, %v454_v46, %v518_v54  ;;  %v587_v61 = vmul.f32 %v1762_v18, %v549_v55  ;;  %v414_v62 = vmul.f32 %v1743_v6, %v375_v51  ;;  %v379_v51 = vld [vmem:[%s1728_s19 + $0x60] sm:$0xff] }
  0x76   : > { %v588_v1 = vmul.f32 %v1762_v18, %v550_v60  ;;  %vm502_vm15 = vcmp.gt.f32.partialorder %v470_v56, 0.0  ;;  %v534_v2 = vmul.f32 0.01, %v470_v56  ;;  %v565_v3 = vsel %vm501_vm14, %v469_v50, %v533_v57 }
  0x77   : > { %1276 = vmatmul.mubr.bf16.vlgmr.msra.gmra.mrb[0].mxu0 %v652_v10  ;;  %1292 = vmatmul.mubr.bf16.vlgmr.msra.gmra.mrb[0].mxu1 %v660_v24  ;;  %v625_v4 = vadd.f32 %v1775_v29, %v587_v61  ;;  %v603_v5 = vmul.f32 %v1762_v18, %v565_v3  ;;  %v415_v7 = vmul.f32 %v1743_v6, %v376_v58  ;;  %v380_v58 = vld [vmem:[%s1728_s19 + $0x68] sm:$0xff] }
  0x78   : > { %1279 = vmatprep.mubr.bf16.mxu0 %v653_v47  ;;  %1295 = vmatprep.mubr.bf16.mxu1 %v661_v59  ;;  %v455_v8 = vadd.f32 %v1750_v9, %v414_v62  ;;  %v626_v10 = vadd.f32 %v1775_v29, %v588_v1  ;;  %v566_v11 = vsel %vm502_vm15, %v470_v56, %v534_v2 }
  0x79   : > { %v430_v12 = vmul.f32 %v1743_v6, %v391_v63  ;;  %v431_v13 = vmul.f32 %v1743_v6, %v392_v0  ;;  %v604_v15 = vmul.f32 %v1762_v18, %v566_v11  ;;  %v641_v16 = vadd.f32 %v1775_v29, %v603_v5  ;;  %v395_v63 = vld [vmem:[%s1728_s19 + $0xe0] sm:$0xff]  ;;  %v396_v0 = vld [vmem:[%s1728_s19 + $0xe8] sm:$0xff] }
  0x7a   : > { %v456_v17 = vadd.f32 %v1750_v9, %v415_v7  ;;  %vm487_vm0 = vcmp.gt.f32.partialorder %v455_v8, 0.0  ;;  %v654_v19 = vpack.c.bf16 %v626_v10, %v625_v4  ;;  %v519_v20 = vmul.f32 0.01, %v455_v8 }
  0x7b   : > { %v471_v21 = vadd.f32 %v1750_v9, %v430_v12  ;;  %v472_v22 = vadd.f32 %v1750_v9, %v431_v13  ;;  %v642_v23 = vadd.f32 %v1775_v29, %v604_v15  ;;  %v416_v26 = vmul.f32 %v1743_v6, %v377_v14  ;;  %v381_v14 = vld [vmem:[%s1728_s19 + $0x70] sm:$0xff] }
  0x7c   : > { %vm488_vm1 = vcmp.gt.f32.partialorder %v456_v17, 0.0  ;;  %v520_v24 = vmul.f32 0.01, %v456_v17  ;;  %v551_v27 = vsel %vm487_vm0, %v455_v8, %v519_v20  ;;  %v417_v37 = vmul.f32 %v1743_v6, %v378_v25  ;;  %v382_v25 = vld [vmem:[%s1728_s19 + $0x78] sm:$0xff] }
  0x7d   : > { %vm503_vm2 = vcmp.gt.f32.partialorder %v471_v21, 0.0  ;;  %vm504_vm3 = vcmp.gt.f32.partialorder %v472_v22, 0.0  ;;  %v535_v28 = vmul.f32 0.01, %v471_v21  ;;  %v662_v31 = vpack.c.bf16 %v642_v23, %v641_v16 }
  0x7e   : > { %v552_v32 = vsel %vm488_vm1, %v456_v17, %v520_v24  ;;  %v589_v33 = vmul.f32 %v1762_v18, %v551_v27  ;;  %v536_v34 = vmul.f32 0.01, %v472_v22  ;;  %v457_v38 = vadd.f32 %v1750_v9, %v416_v26 }
  0x7f   : > { %1280 = vmatmul.mubr.bf16.gmra.mrb[4].mxu0 %v654_v19  ;;  %v590_v35 = vmul.f32 %v1762_v18, %v552_v32  ;;  %v567_v36 = vsel %vm503_vm2, %v471_v21, %v535_v28  ;;  %1296 = vmatmul.mubr.bf16.gmra.mrb[4].mxu1 %v662_v31  ;;  %v432_v43 = vmul.f32 %v1743_v6, %v393_v30  ;;  %v397_v30 = vld [vmem:[%s1728_s19 + $0xf0] sm:$0xff] }
  0x80   : > { %v627_v40 = vadd.f32 %v1775_v29, %v589_v33  ;;  %v568_v41 = vsel %vm504_vm3, %v472_v22, %v536_v34  ;;  %v605_v42 = vmul.f32 %v1762_v18, %v567_v36  ;;  %v458_v46 = vadd.f32 %v1750_v9, %v417_v37 }
  0x81   : > { %v628_v44 = vadd.f32 %v1775_v29, %v590_v35  ;;  %v606_v45 = vmul.f32 %v1762_v18, %v568_v41  ;;  %vm489_vm4 = vcmp.gt.f32.partialorder %v457_v38, 0.0  ;;  %v521_v48 = vmul.f32 0.01, %v457_v38 }
  0x82   : > { %v643_v47 = vadd.f32 %v1775_v29, %v605_v42  ;;  %v433_v49 = vmul.f32 %v1743_v6, %v394_v39  ;;  %v473_v50 = vadd.f32 %v1750_v9, %v432_v43  ;;  %vm490_vm5 = vcmp.gt.f32.partialorder %v458_v46, 0.0  ;;  %v398_v39 = vld [vmem:[%s1728_s19 + $0xf8] sm:$0xff] }
  0x83   : > { %v655_v52 = vpack.c.bf16 %v628_v44, %v627_v40  ;;  %v644_v53 = vadd.f32 %v1775_v29, %v606_v45  ;;  %v522_v54 = vmul.f32 0.01, %v458_v46  ;;  %v553_v55 = vsel %vm489_vm4, %v457_v38, %v521_v48 }
  0x84   : > { %v474_v56 = vadd.f32 %v1750_v9, %v433_v49  ;;  %vm505_vm6 = vcmp.gt.f32.partialorder %v473_v50, 0.0  ;;  %v537_v57 = vmul.f32 0.01, %v473_v50  ;;  %v591_v61 = vmul.f32 %v1762_v18, %v553_v55 }
  0x85   : > { %1283 = vmatprep.mubr.bf16.mxu0 %v655_v52  ;;  %v663_v59 = vpack.c.bf16 %v644_v53, %v643_v47  ;;  %v554_v60 = vsel %vm490_vm5, %v458_v46, %v522_v54  ;;  %v418_v62 = vmul.f32 %v1743_v6, %v379_v51  ;;  %v419_v7 = vmul.f32 %v1743_v6, %v380_v58 }
  0x86   : > { %v592_v1 = vmul.f32 %v1762_v18, %v554_v60  ;;  %vm506_vm7 = vcmp.gt.f32.partialorder %v474_v56, 0.0  ;;  %v538_v2 = vmul.f32 0.01, %v474_v56  ;;  %v569_v3 = vsel %vm505_vm6, %v473_v50, %v537_v57 }
  0x87   : > { %1299 = vmatprep.mubr.bf16.mxu1 %v663_v59  ;;  %v629_v4 = vadd.f32 %v1775_v29, %v591_v61  ;;  %v607_v5 = vmul.f32 %v1762_v18, %v569_v3  ;;  %v459_v8 = vadd.f32 %v1750_v9, %v418_v62  ;;  %v434_v12 = vmul.f32 %v1743_v6, %v395_v63 }
  0x88   : > { %v630_v10 = vadd.f32 %v1775_v29, %v592_v1  ;;  %v570_v11 = vsel %vm506_vm7, %v474_v56, %v538_v2  ;;  %v435_v13 = vmul.f32 %v1743_v6, %v396_v0  ;;  %v460_v17 = vadd.f32 %v1750_v9, %v419_v7  ;;  %v1923_v7 = vld [vmem:[%s2125_s6] ss:$0 sm:$0xff] }
  0x89   : > { %v608_v15 = vmul.f32 %v1762_v18, %v570_v11  ;;  %v645_v16 = vadd.f32 %v1775_v29, %v607_v5  ;;  %vm491_vm8 = vcmp.gt.f32.partialorder %v459_v8, 0.0  ;;  %v523_v20 = vmul.f32 0.01, %v459_v8 }
  0x8a   : > { %v656_v19 = vpack.c.bf16 %v630_v10, %v629_v4  ;;  %v475_v21 = vadd.f32 %v1750_v9, %v434_v12  ;;  %v476_v22 = vadd.f32 %v1750_v9, %v435_v13  ;;  %vm492_vm9 = vcmp.gt.f32.partialorder %v460_v17, 0.0 }
  0x8b   : > { %v646_v23 = vadd.f32 %v1775_v29, %v608_v15  ;;  %v524_v24 = vmul.f32 0.01, %v460_v17  ;;  %v420_v26 = vmul.f32 %v1743_v6, %v381_v14  ;;  %v555_v27 = vsel %vm491_vm8, %v459_v8, %v523_v20 }
  0x8c   : > { %1284 = vmatmul.mubr.bf16.gmra.mrb[8].mxu0 %v656_v19  ;;  %vm507_vm10 = vcmp.gt.f32.partialorder %v475_v21, 0.0  ;;  %vm508_vm11 = vcmp.gt.f32.partialorder %v476_v22, 0.0  ;;  %v539_v28 = vmul.f32 0.01, %v475_v21  ;;  %v593_v33 = vmul.f32 %v1762_v18, %v555_v27 }
  0x8d   : > { %v664_v31 = vpack.c.bf16 %v646_v23, %v645_v16  ;;  %v556_v32 = vsel %vm492_vm9, %v460_v17, %v524_v24  ;;  %v540_v34 = vmul.f32 0.01, %v476_v22  ;;  %v421_v37 = vmul.f32 %v1743_v6, %v382_v25  ;;  %v1937_v24 = vld [vmem:[%s2127_s8] ss:$0 sm:$0xff] }
  0x8e   : > { %v594_v35 = vmul.f32 %v1762_v18, %v556_v32  ;;  %v571_v36 = vsel %vm507_vm10, %v475_v21, %v539_v28  ;;  %v461_v38 = vadd.f32 %v1750_v9, %v420_v26  ;;  %v631_v40 = vadd.f32 %v1775_v29, %v593_v33 }
  0x8f   : > { %1300 = vmatmul.mubr.bf16.gmra.mrb[8].mxu1 %v664_v31  ;;  %v572_v41 = vsel %vm508_vm11, %v476_v22, %v540_v34  ;;  %v609_v42 = vmul.f32 %v1762_v18, %v571_v36  ;;  %v436_v43 = vmul.f32 %v1743_v6, %v397_v30  ;;  %v462_v46 = vadd.f32 %v1750_v9, %v421_v37 }
  0x90   : > { %v632_v44 = vadd.f32 %v1775_v29, %v594_v35  ;;  %v610_v45 = vmul.f32 %v1762_v18, %v572_v41  ;;  %vm493_vm12 = vcmp.gt.f32.partialorder %v461_v38, 0.0  ;;  %v525_v48 = vmul.f32 0.01, %v461_v38 }
  0x91   : > { %v647_v47 = vadd.f32 %v1775_v29, %v609_v42  ;;  %v437_v49 = vmul.f32 %v1743_v6, %v398_v39  ;;  %v477_v50 = vadd.f32 %v1750_v9, %v436_v43  ;;  %vm494_vm13 = vcmp.gt.f32.partialorder %v462_v46, 0.0 }
  0x92   : > { %v657_v51 = vpack.c.bf16 %v632_v44, %v631_v40  ;;  %v648_v52 = vadd.f32 %v1775_v29, %v610_v45  ;;  %v526_v53 = vmul.f32 0.01, %v462_v46  ;;  %v557_v54 = vsel %vm493_vm12, %v461_v38, %v525_v48 }
  0x93   : > { %v478_v55 = vadd.f32 %v1750_v9, %v437_v49  ;;  %vm509_vm14 = vcmp.gt.f32.partialorder %v477_v50, 0.0  ;;  %v541_v56 = vmul.f32 0.01, %v477_v50  ;;  %v595_v59 = vmul.f32 %v1762_v18, %v557_v54 }
  0x94   : > { %1287 = vmatprep.mubr.bf16.mxu0 %v657_v51  ;;  %v665_v57 = vpack.c.bf16 %v648_v52, %v647_v47  ;;  %v558_v58 = vsel %vm494_vm13, %v462_v46, %v526_v53 }
  0x95   : > { %v596_v60 = vmul.f32 %v1762_v18, %v558_v58  ;;  %vm510_vm15 = vcmp.gt.f32.partialorder %v478_v55, 0.0  ;;  %v542_v6 = vmul.f32 0.01, %v478_v55  ;;  %v573_v61 = vsel %vm509_vm14, %v477_v50, %v541_v56 }
  0x96   : > { %1303 = vmatprep.mubr.bf16.mxu1 %v665_v57  ;;  %v633_v62 = vadd.f32 %v1775_v29, %v595_v59  ;;  %v611_v63 = vmul.f32 %v1762_v18, %v573_v61 }
  0x97   : > { %v634_v0 = vadd.f32 %v1775_v29, %v596_v60  ;;  %v574_v9 = vsel %vm510_vm15, %v478_v55, %v542_v6 }
  0x98   : > { %v612_v1 = vmul.f32 %v1762_v18, %v574_v9  ;;  %v649_v2 = vadd.f32 %v1775_v29, %v611_v63 }
  0x99   : > { %v658_v3 = vpack.c.bf16 %v634_v0, %v633_v62 }
  0x9a   : > { %v650_v4 = vadd.f32 %v1775_v29, %v612_v1  ;;  %v1930_v29 = vld [vmem:[%s2126_s7] ss:$0 sm:$0xff] }
  0x9b   : > { %1288 = vmatmul.mubr.bf16.gmra.mrb[12].mxu0 %v658_v3 }
  0x9c   : > { %v666_v5 = vpack.c.bf16 %v650_v4, %v649_v2 }
  0x9e   : > { %1304 = vmatmul.mubr.bf16.gmra.mrb[12].mxu1 %v666_v5 }
 0x14a   : > { %v1277_v8 = vpop.f32.mrb[0].mxu0  ;;  %v1293_v10 = vpop.f32.mrb[0].mxu1 }
 0x14b   : > { %v781_v11 = vadd.f32 %v1277_v8, %v1923_v7  ;;  %v845_v12 = vadd.f32 %v1293_v10, %v1923_v7  ;;  %v772_v18 = vpop.f32.mrb[1].mxu0  ;;  %v836_v13 = vpop.f32.mrb[1].mxu1 }
 0x14c   : > { %v773_v14 = vadd.f32 %v1923_v7, %v772_v18  ;;  %v837_v15 = vadd.f32 %v1923_v7, %v836_v13  ;;  %v1278_v16 = vpop.f32.mrb[2].mxu0  ;;  %v1294_v17 = vpop.f32.mrb[2].mxu1 }
 0x14d   : > { %vm901_vm0 = vcmp.gt.f32.partialorder %v781_v11, 0.0  ;;  %v933_v19 = vmul.f32 0.01, %v781_v11  ;;  %vm917_vm1 = vcmp.gt.f32.partialorder %v845_v12, 0.0  ;;  %v949_v20 = vmul.f32 0.01, %v845_v12 }
 0x14e   : > { %vm899_vm2 = vcmp.gt.f32.partialorder %v773_v14, 0.0  ;;  %v931_v21 = vmul.f32 0.01, %v773_v14  ;;  %vm915_vm3 = vcmp.gt.f32.partialorder %v837_v15, 0.0  ;;  %v947_v22 = vmul.f32 0.01, %v837_v15 }
 0x14f   : > { %v965_v23 = vsel %vm901_vm0, %v781_v11, %v933_v19  ;;  %v981_v25 = vsel %vm917_vm1, %v845_v12, %v949_v20  ;;  %v784_v26 = vadd.f32 %v1278_v16, %v1923_v7  ;;  %v848_v27 = vadd.f32 %v1294_v17, %v1923_v7  ;;  %v775_v28 = vpop.f32.mrb[3].mxu0  ;;  %v839_v30 = vpop.f32.mrb[3].mxu1 }
 0x150   : > { %v1004_v31 = vmul.f32 %v1930_v29, %v965_v23  ;;  %v1020_v32 = vmul.f32 %v1930_v29, %v981_v25  ;;  %v963_v33 = vsel %vm899_vm2, %v773_v14, %v931_v21  ;;  %v979_v34 = vsel %vm915_vm3, %v837_v15, %v947_v22 }
 0x151   : > { %v1002_v35 = vmul.f32 %v1930_v29, %v963_v33  ;;  %v1018_v36 = vmul.f32 %v1930_v29, %v979_v34  ;;  %vm902_vm4 = vcmp.gt.f32.partialorder %v784_v26, 0.0  ;;  %v934_v37 = vmul.f32 0.01, %v784_v26 }
 0x152   : > { %v1043_v38 = vadd.f32 %v1937_v24, %v1004_v31  ;;  %v1059_v39 = vadd.f32 %v1937_v24, %v1020_v32  ;;  %vm918_vm5 = vcmp.gt.f32.partialorder %v848_v27, 0.0  ;;  %v950_v40 = vmul.f32 0.01, %v848_v27  ;;  %v1281_v52 = vpop.f32.mrb[4].mxu0  ;;  %v1297_v62 = vpop.f32.mrb[4].mxu1 }
 0x153   : > { %v1041_v41 = vadd.f32 %v1937_v24, %v1002_v35  ;;  %v1057_v42 = vadd.f32 %v1937_v24, %v1018_v36  ;;  %v966_v43 = vsel %vm902_vm4, %v784_v26, %v934_v37  ;;  %v776_v44 = vadd.f32 %v1923_v7, %v775_v28  ;;  %v788_v56 = vpop.f32.mrb[5].mxu0  ;;  %v852_v3 = vpop.f32.mrb[5].mxu1 }
 0x154   : > { %1075 = vst [vmem:[%s1952_s26 + $0x10] sm:$0xff] %v1043_v38  ;;  %1091 = vst [vmem:[%s1952_s26 + $0x90] sm:$0xff] %v1059_v39  ;;  %v1005_v45 = vmul.f32 %v1930_v29, %v966_v43  ;;  %v982_v46 = vsel %vm918_vm5, %v848_v27, %v950_v40  ;;  %v840_v47 = vadd.f32 %v1923_v7, %v839_v30  ;;  %v1282_v60 = vpop.f32.mrb[6].mxu0  ;;  %v1298_v10 = vpop.f32.mrb[6].mxu1 }
 0x155   : > { %1073 = vst [vmem:[%s1952_s26] sm:$0xff] %v1041_v41  ;;  %1089 = vst [vmem:[%s1952_s26 + $0x80] sm:$0xff] %v1057_v42  ;;  %v1021_v48 = vmul.f32 %v1930_v29, %v982_v46  ;;  %vm900_vm6 = vcmp.gt.f32.partialorder %v776_v44, 0.0  ;;  %v932_v49 = vmul.f32 0.01, %v776_v44  ;;  %v797_v55 = vadd.f32 %v1281_v52, %v1923_v7  ;;  %v791_v0 = vpop.f32.mrb[7].mxu0  ;;  %v855_v13 = vpop.f32.mrb[7].mxu1 }
 0x156   : > { %v1044_v50 = vadd.f32 %v1937_v24, %v1005_v45  ;;  %vm916_vm7 = vcmp.gt.f32.partialorder %v840_v47, 0.0  ;;  %v948_v51 = vmul.f32 0.01, %v840_v47  ;;  %v789_v59 = vadd.f32 %v1923_v7, %v788_v56 }
 0x157   : > { %v1060_v53 = vadd.f32 %v1937_v24, %v1021_v48  ;;  %v964_v54 = vsel %vm900_vm6, %v776_v44, %v932_v49  ;;  %vm905_vm8 = vcmp.gt.f32.partialorder %v797_v55, 0.0  ;;  %v937_v61 = vmul.f32 0.01, %v797_v55 }
 0x158   : > { %1076 = vst [vmem:[%s1952_s26 + $0x18] sm:$0xff] %v1044_v50  ;;  %v1003_v57 = vmul.f32 %v1930_v29, %v964_v54  ;;  %v980_v58 = vsel %vm916_vm7, %v840_v47, %v948_v51  ;;  %v800_v63 = vadd.f32 %v1282_v60, %v1923_v7  ;;  %v861_v1 = vadd.f32 %v1297_v62, %v1923_v7 }
 0x159   : > { %1092 = vst [vmem:[%s1952_s26 + $0x98] sm:$0xff] %v1060_v53  ;;  %v1019_v6 = vmul.f32 %v1930_v29, %v980_v58  ;;  %vm903_vm9 = vcmp.gt.f32.partialorder %v789_v59, 0.0  ;;  %v935_v2 = vmul.f32 0.01, %v789_v59  ;;  %v969_v5 = vsel %vm905_vm8, %v797_v55, %v937_v61 }
 0x15a   : > { %v1042_v9 = vadd.f32 %v1937_v24, %v1003_v57  ;;  %v853_v8 = vadd.f32 %v1923_v7, %v852_v3  ;;  %vm906_vm10 = vcmp.gt.f32.partialorder %v800_v63, 0.0  ;;  %v1008_v11 = vmul.f32 %v1930_v29, %v969_v5 }
 0x15b   : > { %v1058_v4 = vadd.f32 %v1937_v24, %v1019_v6  ;;  %vm921_vm11 = vcmp.gt.f32.partialorder %v861_v1, 0.0  ;;  %v953_v12 = vmul.f32 0.01, %v861_v1  ;;  %v967_v18 = vsel %vm903_vm9, %v789_v59, %v935_v2 }
 0x15c   : > { %1074 = vst [vmem:[%s1952_s26 + $0x8] sm:$0xff] %v1042_v9  ;;  %v1006_v14 = vmul.f32 %v1930_v29, %v967_v18  ;;  %vm919_vm12 = vcmp.gt.f32.partialorder %v853_v8, 0.0  ;;  %v951_v15 = vmul.f32 0.01, %v853_v8  ;;  %v938_v16 = vmul.f32 0.01, %v800_v63 }
 0x15d   : > { %1090 = vst [vmem:[%s1952_s26 + $0x88] sm:$0xff] %v1058_v4  ;;  %v1047_v17 = vadd.f32 %v1937_v24, %v1008_v11  ;;  %v985_v19 = vsel %vm921_vm11, %v861_v1, %v953_v12  ;;  %v864_v20 = vadd.f32 %v1298_v10, %v1923_v7  ;;  %v792_v21 = vadd.f32 %v1923_v7, %v791_v0 }
 0x15e   : > { %v1024_v22 = vmul.f32 %v1930_v29, %v985_v19  ;;  %v1045_v23 = vadd.f32 %v1937_v24, %v1006_v14  ;;  %v983_v25 = vsel %vm919_vm12, %v853_v8, %v951_v15  ;;  %v970_v26 = vsel %vm906_vm10, %v800_v63, %v938_v16 }
 0x15f   : > { %1079 = vst [vmem:[%s1952_s26 + $0x30] sm:$0xff] %v1047_v17  ;;  %v1022_v27 = vmul.f32 %v1930_v29, %v983_v25  ;;  %v1009_v28 = vmul.f32 %v1930_v29, %v970_v26  ;;  %vm922_vm13 = vcmp.gt.f32.partialorder %v864_v20, 0.0  ;;  %v954_v30 = vmul.f32 0.01, %v864_v20  ;;  %v1285_v43 = vpop.f32.mrb[8].mxu0 }
 0x160   : > { %v1063_v31 = vadd.f32 %v1937_v24, %v1024_v22  ;;  %1077 = vst [vmem:[%s1952_s26 + $0x20] sm:$0xff] %v1045_v23  ;;  %vm904_vm14 = vcmp.gt.f32.partialorder %v792_v21, 0.0  ;;  %v936_v32 = vmul.f32 0.01, %v792_v21  ;;  %v856_v33 = vadd.f32 %v1923_v7, %v855_v13  ;;  %v804_v47 = vpop.f32.mrb[9].mxu0 }
 0x161   : > { %v1061_v34 = vadd.f32 %v1937_v24, %v1022_v27  ;;  %v1048_v35 = vadd.f32 %v1937_v24, %v1009_v28  ;;  %v986_v36 = vsel %vm922_vm13, %v864_v20, %v954_v30  ;;  %v813_v46 = vadd.f32 %v1285_v43, %v1923_v7  ;;  %v1286_v49 = vpop.f32.mrb[10].mxu0 }
 0x162   : > { %1095 = vst [vmem:[%s1952_s26 + $0xb0] sm:$0xff] %v1063_v31  ;;  %v1025_v37 = vmul.f32 %v1930_v29, %v986_v36  ;;  %v968_v38 = vsel %vm904_vm14, %v792_v21, %v936_v32  ;;  %vm920_vm15 = vcmp.gt.f32.partialorder %v856_v33, 0.0  ;;  %v952_v39 = vmul.f32 0.01, %v856_v33  ;;  %v1301_v52 = vpop.f32.mrb[8].mxu1  ;;  %v807_v54 = vpop.f32.mrb[11].mxu0 }
 0x163   : > { %1093 = vst [vmem:[%s1952_s26 + $0xa0] sm:$0xff] %v1061_v34  ;;  %1080 = vst [vmem:[%s1952_s26 + $0x38] sm:$0xff] %v1048_v35  ;;  %v1007_v40 = vmul.f32 %v1930_v29, %v968_v38  ;;  %v805_v48 = vadd.f32 %v1923_v7, %v804_v47  ;;  %vm909_vm0 = vcmp.gt.f32.partialorder %v813_v46, 0.0  ;;  %v941_v51 = vmul.f32 0.01, %v813_v46  ;;  %v868_v57 = vpop.f32.mrb[9].mxu1 }
 0x164   : > { %v1064_v41 = vadd.f32 %v1937_v24, %v1025_v37  ;;  %v984_v42 = vsel %vm920_vm15, %v856_v33, %v952_v39  ;;  %v816_v53 = vadd.f32 %v1286_v49, %v1923_v7  ;;  %v877_v55 = vadd.f32 %v1301_v52, %v1923_v7  ;;  %v1302_v61 = vpop.f32.mrb[10].mxu1 }
 0x165   : > { %v1046_v44 = vadd.f32 %v1937_v24, %v1007_v40  ;;  %v1023_v45 = vmul.f32 %v1930_v29, %v984_v42  ;;  %vm907_vm1 = vcmp.gt.f32.partialorder %v805_v48, 0.0  ;;  %v939_v56 = vmul.f32 0.01, %v805_v48  ;;  %v871_v9 = vpop.f32.mrb[11].mxu1 }
 0x166   : > { %1096 = vst [vmem:[%s1952_s26 + $0xb8] sm:$0xff] %v1064_v41  ;;  %v808_v58 = vadd.f32 %v1923_v7, %v807_v54  ;;  %v973_v59 = vsel %vm909_vm0, %v813_v46, %v941_v51  ;;  %v869_v60 = vadd.f32 %v1923_v7, %v868_v57  ;;  %vm910_vm2 = vcmp.gt.f32.partialorder %v816_v53, 0.0 }
 0x167   : > { %1078 = vst [vmem:[%s1952_s26 + $0x28] sm:$0xff] %v1046_v44  ;;  %v1062_v50 = vadd.f32 %v1937_v24, %v1023_v45  ;;  %v942_v6 = vmul.f32 0.01, %v816_v53  ;;  %v1012_v62 = vmul.f32 %v1930_v29, %v973_v59  ;;  %vm925_vm3 = vcmp.gt.f32.partialorder %v877_v55, 0.0 }
 0x168   : > { %v957_v63 = vmul.f32 0.01, %v877_v55  ;;  %v971_v0 = vsel %vm907_vm1, %v805_v48, %v939_v56  ;;  %vm923_vm4 = vcmp.gt.f32.partialorder %v869_v60, 0.0  ;;  %v955_v2 = vmul.f32 0.01, %v869_v60 }
 0x169   : > { %1094 = vst [vmem:[%s1952_s26 + $0xa8] sm:$0xff] %v1062_v50  ;;  %v1010_v1 = vmul.f32 %v1930_v29, %v971_v0  ;;  %v974_v3 = vsel %vm910_vm2, %v816_v53, %v942_v6  ;;  %v1051_v4 = vadd.f32 %v1937_v24, %v1012_v62  ;;  %v880_v10 = vadd.f32 %v1302_v61, %v1923_v7 }
 0x16a   : > { %v989_v5 = vsel %vm925_vm3, %v877_v55, %v957_v63  ;;  %v1013_v8 = vmul.f32 %v1930_v29, %v974_v3  ;;  %v987_v18 = vsel %vm923_vm4, %v869_v60, %v955_v2  ;;  %vm908_vm5 = vcmp.gt.f32.partialorder %v808_v58, 0.0 }
 0x16b   : > { %v1028_v11 = vmul.f32 %v1930_v29, %v989_v5  ;;  %v1049_v12 = vadd.f32 %v1937_v24, %v1010_v1  ;;  %1083 = vst [vmem:[%s1952_s26 + $0x50] sm:$0xff] %v1051_v4  ;;  %v1026_v13 = vmul.f32 %v1930_v29, %v987_v18  ;;  %vm926_vm6 = vcmp.gt.f32.partialorder %v880_v10, 0.0 }
 0x16c   : > { %v1052_v14 = vadd.f32 %v1937_v24, %v1013_v8  ;;  %v958_v15 = vmul.f32 0.01, %v880_v10  ;;  %v940_v17 = vmul.f32 0.01, %v808_v58  ;;  %v872_v19 = vadd.f32 %v1923_v7, %v871_v9 }
 0x16d   : > { %v1067_v16 = vadd.f32 %v1937_v24, %v1028_v11  ;;  %1081 = vst [vmem:[%s1952_s26 + $0x40] sm:$0xff] %v1049_v12  ;;  %v1065_v20 = vadd.f32 %v1937_v24, %v1026_v13 }
 0x16e   : > { %1084 = vst [vmem:[%s1952_s26 + $0x58] sm:$0xff] %v1052_v14  ;;  %v990_v21 = vsel %vm926_vm6, %v880_v10, %v958_v15  ;;  %v972_v23 = vsel %vm908_vm5, %v808_v58, %v940_v17  ;;  %vm924_vm7 = vcmp.gt.f32.partialorder %v872_v19, 0.0  ;;  %v956_v25 = vmul.f32 0.01, %v872_v19  ;;  %v1289_v30 = vpop.f32.mrb[12].mxu0 }
 0x16f   : > { %1099 = vst [vmem:[%s1952_s26 + $0xd0] sm:$0xff] %v1067_v16  ;;  %v1029_v22 = vmul.f32 %v1930_v29, %v990_v21  ;;  %1097 = vst [vmem:[%s1952_s26 + $0xc0] sm:$0xff] %v1065_v20  ;;  %v1011_v26 = vmul.f32 %v1930_v29, %v972_v23  ;;  %v829_v33 = vadd.f32 %v1289_v30, %v1923_v7  ;;  %v820_v34 = vpop.f32.mrb[13].mxu0 }
 0x170   : > { %v988_v28 = vsel %vm924_vm7, %v872_v19, %v956_v25  ;;  %v821_v35 = vadd.f32 %v1923_v7, %v820_v34  ;;  %v1290_v36 = vpop.f32.mrb[14].mxu0 }
 0x171   : > { %v1068_v27 = vadd.f32 %v1937_v24, %v1029_v22  ;;  %v1050_v31 = vadd.f32 %v1937_v24, %v1011_v26  ;;  %v1027_v32 = vmul.f32 %v1930_v29, %v988_v28  ;;  %vm913_vm8 = vcmp.gt.f32.partialorder %v829_v33, 0.0  ;;  %v1305_v39 = vpop.f32.mrb[12].mxu1  ;;  %v823_v41 = vpop.f32.mrb[15].mxu0 }
 0x172   : > { %v945_v38 = vmul.f32 0.01, %v829_v33  ;;  %v832_v40 = vadd.f32 %v1290_v36, %v1923_v7  ;;  %v893_v42 = vadd.f32 %v1305_v39, %v1923_v7  ;;  %vm911_vm9 = vcmp.gt.f32.partialorder %v821_v35, 0.0  ;;  %v884_v44 = vpop.f32.mrb[13].mxu1 }
 0x173   : > { %1100 = vst [vmem:[%s1952_s26 + $0xd8] sm:$0xff] %v1068_v27  ;;  %1082 = vst [vmem:[%s1952_s26 + $0x48] sm:$0xff] %v1050_v31  ;;  %v1066_v37 = vadd.f32 %v1937_v24, %v1027_v32  ;;  %v943_v43 = vmul.f32 0.01, %v821_v35  ;;  %v824_v45 = vadd.f32 %v1923_v7, %v823_v41  ;;  %v885_v47 = vadd.f32 %v1923_v7, %v884_v44  ;;  %v1306_v49 = vpop.f32.mrb[14].mxu1 }
 0x174   : > { %v977_v46 = vsel %vm913_vm8, %v829_v33, %v945_v38  ;;  %vm914_vm10 = vcmp.gt.f32.partialorder %v832_v40, 0.0  ;;  %v946_v48 = vmul.f32 0.01, %v832_v40  ;;  %vm929_vm11 = vcmp.gt.f32.partialorder %v893_v42, 0.0  ;;  %v887_v53 = vpop.f32.mrb[15].mxu1 }
 0x175   : > { %1098 = vst [vmem:[%s1952_s26 + $0xc8] sm:$0xff] %v1066_v37  ;;  %v1016_v50 = vmul.f32 %v1930_v29, %v977_v46  ;;  %v961_v51 = vmul.f32 0.01, %v893_v42  ;;  %v975_v52 = vsel %vm911_vm9, %v821_v35, %v943_v43  ;;  %vm927_vm12 = vcmp.gt.f32.partialorder %v885_v47, 0.0 }
 0x176   : > { %v1014_v54 = vmul.f32 %v1930_v29, %v975_v52  ;;  %v959_v55 = vmul.f32 0.01, %v885_v47  ;;  %v978_v56 = vsel %vm914_vm10, %v832_v40, %v946_v48  ;;  %v896_v60 = vadd.f32 %v1306_v49, %v1923_v7 }
 0x177   : > { %v1055_v57 = vadd.f32 %v1937_v24, %v1016_v50  ;;  %v993_v58 = vsel %vm929_vm11, %v893_v42, %v961_v51  ;;  %v1017_v59 = vmul.f32 %v1930_v29, %v978_v56  ;;  %vm912_vm13 = vcmp.gt.f32.partialorder %v824_v45, 0.0 }
 0x178   : > { %v1032_v6 = vmul.f32 %v1930_v29, %v993_v58  ;;  %v1053_v61 = vadd.f32 %v1937_v24, %v1014_v54  ;;  %v991_v62 = vsel %vm927_vm12, %v885_v47, %v959_v55  ;;  %vm930_vm14 = vcmp.gt.f32.partialorder %v896_v60, 0.0 }
 0x179   : > { %1087 = vst [vmem:[%s1952_s26 + $0x70] sm:$0xff] %v1055_v57  ;;  %v1030_v63 = vmul.f32 %v1930_v29, %v991_v62  ;;  %v1056_v0 = vadd.f32 %v1937_v24, %v1017_v59  ;;  %v962_v9 = vmul.f32 0.01, %v896_v60  ;;  %v944_v2 = vmul.f32 0.01, %v824_v45 }
 0x17a   : > { %v1071_v1 = vadd.f32 %v1937_v24, %v1032_v6  ;;  %1085 = vst [vmem:[%s1952_s26 + $0x60] sm:$0xff] %v1053_v61  ;;  %v888_v3 = vadd.f32 %v1923_v7, %v887_v53 }
 0x17b   : > { %v1069_v4 = vadd.f32 %v1937_v24, %v1030_v63  ;;  %1088 = vst [vmem:[%s1952_s26 + $0x78] sm:$0xff] %v1056_v0  ;;  %v994_v5 = vsel %vm930_vm14, %v896_v60, %v962_v9  ;;  %v976_v10 = vsel %vm912_vm13, %v824_v45, %v944_v2 }
 0x17c   : > { %1103 = vst [vmem:[%s1952_s26 + $0xf0] sm:$0xff] %v1071_v1  ;;  %v1033_v8 = vmul.f32 %v1930_v29, %v994_v5  ;;  %vm928_vm15 = vcmp.gt.f32.partialorder %v888_v3, 0.0  ;;  %v960_v11 = vmul.f32 0.01, %v888_v3  ;;  %v1015_v12 = vmul.f32 %v1930_v29, %v976_v10 }
 0x17d   : > { %1101 = vst [vmem:[%s1952_s26 + $0xe0] sm:$0xff] %v1069_v4 }
 0x17e   : > { %v1072_v7 = vadd.f32 %v1937_v24, %v1033_v8  ;;  %v992_v18 = vsel %vm928_vm15, %v888_v3, %v960_v11  ;;  %v1054_v13 = vadd.f32 %v1937_v24, %v1015_v12 }
 0x17f   : > { %v1031_v14 = vmul.f32 %v1930_v29, %v992_v18 }
 0x180   : > { %1104 = vst [vmem:[%s1952_s26 + $0xf8] sm:$0xff] %v1072_v7  ;;  %1086 = vst [vmem:[%s1952_s26 + $0x68] sm:$0xff] %v1054_v13 }
 0x181   : > { %v1070_v15 = vadd.f32 %v1937_v24, %v1031_v14 }
 0x183   : > { %1102 = vst [vmem:[%s1952_s26 + $0xe8] sm:$0xff] %v1070_v15 }
 0x184   : > { %1465 = shalt.err (!%p1462_p7)
}
 0x185   : > { %s1466_s19 = scalar_lea.hbm %s2070_s16, 4096  ;;  %s1470_s26 = scalar_lea.hbm %s2128_s9, 8192 }
 0x186   : > { %p1467_p9 = scmp.ne.s32.totalorder %s2070_s16, %s1466_s19  ;;  %p1471_p5 = scmp.lt.u32.totalorder %s2070_s16, %s2128_s9 }
 0x187   : > { %p1472_p11 = scmp.lt.u32.totalorder %s1470_s26, %s1466_s19  ;;  %p1474_p4 = scmp.lt.u32.totalorder %s1466_s19, %s2070_s16 }
 0x188   : > { %p1468_p2 = pnand %p1467_p9, %p1674_p12 }
 0x189   : > { %p1473_p1 = por %p1472_p11, %p1471_p5 }
 0x18a   : > { %p1469_p0 = pneg %p1468_p2 }
 0x18b   : > { %p1475_p6 = por %p1474_p4, %p1473_p1 }
 0x18d   : > { %p1476_p8 = pnand %p1475_p6, %p1469_p0 }
 0x18f   : > { %1479 = shalt.err (!%p1476_p8)
}
 0x190   : > { %s1531_s24 = smov 128   ;;  %s1532_s21 = smov 8  }
 0x191   : > { %1329 = dma.vmem_to_hbm [thread:$0]  (%p1674_p12), %s2072_s22, 4096, %s2070_s16, %s1106_s13, %s1531_s24, %s1531_s24, %s1532_s21  }
 0x192 PF: > { %s2148_s25 = sld [smem:[#allocation11_spill]]  ;;  %s1134_s27 = sand.u32 1, %s1510_s30  }
 0x193   : > { %p2150_p13 = scmp.ge.s32.totalorder %s1522_s12, 2  ;;  %s1135_s14 = scalar_lea.sflag [#allocation4], %s1134_s27 }
 0x198   : > { %p2149_p10 = scmp.ne.s32.totalorder %s2148_s25, 0 }
 0x19a   : > { %p1340_p3 = pnand %p2150_p13, %p2149_p10 }
 0x19c   : > { %1505 = dma.done.wait (!%p1340_p3), %s1135_s14, 4096  }
 0x19d   : > { %1507 = vsyncadd (!%p1340_p3), %s1135_s14, 4294963200  ;;  %s2151_s12 = sld [smem:[#allocation12_spill]]  ;;  %s2152_s30 = smov %s1514_s10 }
 0x19e   : > { %s2153_s10 = smov %s1518_s11  ;;  %s2154_s11 = smov %s1670_s28 }
 0x1a3   : > { %p23_p7 = scmp.ge.s32.totalorder %s2151_s12, 4  }
 0x1a5   :  { %25 = sbr.rel (!%p23_p7) target bundleno = 6 (0x6), region = 105 }
 0x1ac   :  { %1140 = vsyncpa [#allocation3], 1 }
 0x1ad   :  { %1142 = vsyncpa [#allocation3 + $0x1], 1 }
 0x1ae   :  { %1143 = vsyncpa [#allocation6], 1 }
 0x1af   :  { %1144 = vsyncpa [#allocation4], 1 }
 0x1b0   :  { %1146 = vsyncpa [#allocation4 + $0x1], 1 }

</bundles_post_ra>
